<compile_context>
chip_gen: v6e
topology: v6e:2x2x1
jax: 0.10.0
libtpu: 0.0.40
codegen_flags: <defaults>
</compile_context>

<pallas_src>
import functools

import jax
import jax.numpy as jnp
from jax.experimental import pallas as pl
from jax.experimental.pallas import tpu as pltpu


# ----------------------------- helpers (glue) ------------------------------ #

def sub_filter_start_end(kernel_size, sub_kernel_size):
    center = kernel_size // 2
    dev = sub_kernel_size // 2
    return center - dev, center + dev + 1


def get_same_padding(kernel_size):
    assert kernel_size % 2 == 1, "kernel size should be odd"
    return kernel_size // 2


def _out_size(size, padding, dilation, K, stride):
    return (size + 2 * padding - dilation * (K - 1) - 1) // stride + 1


# --------------- kernel 1: NCHW, W in lanes (stride-1 layers) --------------- #

def _dwconv_w_lanes_kernel(x_ref, w_ref, o_ref, xpad_ref, *,
                           K, dilation, padding, H, W, Hp, Wp, Ho, Wo, Cblk):
    """Stride-1 depthwise conv for one (batch, channel-block) grid step.

    x_ref    : (1, Cblk, H, W)   input channel block (VMEM)
    w_ref    : (C*K*K,) f32      all taps, flat scalars (SMEM).  Only small-C layers are
                                 routed here; big-C layers use the c_lanes (VMEM) path,
                                 which keeps this SMEM array small.
    o_ref    : (1, Cblk, Ho, Wo) output block (VMEM)
    xpad_ref : (Hp, Wp) f32      zero-padded scratch, reused for every channel of the
                                 block (channels are processed sequentially in-step).
    """
    cb = pl.program_id(1)
    KK = K * K

    # Border-only zeroing (interior is fully rewritten per channel below, and the border
    # stays zero across channels, so this runs once per grid step).
    if padding > 0:
        xpad_ref[0:padding, :] = jnp.zeros((padding, Wp), jnp.float32)
        xpad_ref[Hp - padding:Hp, :] = jnp.zeros((padding, Wp), jnp.float32)
        xpad_ref[:, 0:padding] = jnp.zeros((Hp, padding), jnp.float32)
        xpad_ref[:, Wp - padding:Wp] = jnp.zeros((Hp, padding), jnp.float32)

    def channel_body(ci):
        # Cast + pad exactly once per channel, hoisted out of the K*K tap loop.
        xpad_ref[pl.ds(padding, H), pl.ds(padding, W)] = (
            x_ref[0, ci].astype(jnp.float32))
        w_base = (cb * Cblk + ci) * KK
        acc = jnp.zeros((Ho, Wo), jnp.float32)
        for kh in range(K):
            for kw in range(K):
                tap = xpad_ref[pl.ds(kh * dilation, Ho), pl.ds(kw * dilation, Wo)]
                acc = acc + tap * w_ref[w_base + kh * K + kw]
        o_ref[0, ci] = acc.astype(o_ref.dtype)

    pl.loop(0, Cblk)(channel_body)


def _depthwise_w_lanes(x_nchw, filters, dilation, padding):
    N, C, H, W = x_nchw.shape
    K = filters.shape[-1]
    KK = K * K
    Hp, Wp = H + 2 * padding, W + 2 * padding
    Ho = _out_size(H, padding, dilation, K, 1)
    Wo = _out_size(W, padding, dilation, K, 1)

    itemsize = x_nchw.dtype.itemsize
    per_channel = 2 * H * W * itemsize + 2 * Ho * Wo * itemsize   # double-buffered in/out
    fixed = Hp * Wp * 4                                           # shared padded scratch

    # Largest channel block that divides C, fits a conservative VMEM budget, and (at
    # batch 1) leaves >= 2 channel blocks so both v7x TensorCores get work.
    max_cblk = max(1, min(32, 512 // KK))
    budget = 20 << 20
    Cblk = 1
    for d in range(1, max_cblk + 1):
        if C % d:
            continue
        if fixed + d * per_channel > budget:
            break
        if N == 1 and C >= 2 and C // d < 2:
            continue
        Cblk = d

    per_step = fixed + Cblk * per_channel
    vmem_limit = int(min(48 << 20, max(16 << 20, per_step + (8 << 20))))

    # Flat per-channel taps -> SMEM scalars (index: c*K*K + kh*K + kw).
    w_flat = filters.astype(jnp.float32).reshape(-1)

    kernel = functools.partial(
        _dwconv_w_lanes_kernel, K=K, dilation=dilation, padding=padding,
        H=H, W=W, Hp=Hp, Wp=Wp, Ho=Ho, Wo=Wo, Cblk=Cblk)

    return pl.pallas_call(
        kernel,
        out_shape=jax.ShapeDtypeStruct((N, C, Ho, Wo), x_nchw.dtype),
        grid=(N, C // Cblk),
        in_specs=[
            pl.BlockSpec((1, Cblk, H, W), lambda n, cb: (n, cb, 0, 0)),
            pl.BlockSpec(memory_space=pltpu.MemorySpace.SMEM),
        ],
        out_specs=pl.BlockSpec((1, Cblk, Ho, Wo), lambda n, cb: (n, cb, 0, 0)),
        scratch_shapes=[pltpu.VMEM((Hp, Wp), jnp.float32)],
        compiler_params=pltpu.CompilerParams(
            dimension_semantics=("parallel", "parallel"),
            vmem_limit_bytes=vmem_limit),
    )(x_nchw, w_flat)


# --------- kernel 2: NHWC, C in lanes (small spatial / wide C / strided) ---- #

def _dwconv_c_lanes_kernel(x_ref, w_ref, o_ref, xpad_ref, *,
                           K, stride, dilation, padding,
                           H, W, Hp, Wp, Ho, Wo, Cblk, row_chunk):
    """Depthwise conv (any stride) for one (batch, channel-block), channels in lanes.

    x_ref    : (1, H, W, Cblk)     input block (VMEM), C in lanes
    w_ref    : (K*K, Cblk) f32     per-tap weight rows (VMEM row broadcast)
    o_ref    : (1, Ho, Wo, Cblk)   output block (VMEM), lane-dense stores
    xpad_ref : (Hp, Wp, Cblk) f32  zero-padded, f32-cast input scratch
    """
    # Top/bottom border rows: 'padding' is a tiny static count -> unrolled, static idx.
    if padding > 0:
        zrow = jnp.zeros((Wp, Cblk), jnp.float32)
        for r in range(padding):
            xpad_ref[r] = zrow
            xpad_ref[Hp - 1 - r] = zrow

    # Interior rows: left/right border columns + f32-cast interior copy, one padded row
    # at a time (keeps each live value to a handful of vregs even at 112x112xCblk).
    def fill_row(r):
        if padding > 0:
            zcol = jnp.zeros((padding, Cblk), jnp.float32)
            xpad_ref[padding + r, 0:padding, :] = zcol
            xpad_ref[padding + r, Wp - padding:Wp, :] = zcol
        xpad_ref[padding + r, pl.ds(padding, W), :] = x_ref[0, r].astype(jnp.float32)

    pl.loop(0, H)(fill_row)

    # Output rows in chunks so the accumulator stays ~<= 16 vregs.  Stride decimation is
    # done with ref-level strided slices; the lane dim (C) is never strided.
    for ho0 in range(0, Ho, row_chunk):
        rows = row_chunk
        acc = jnp.zeros((rows, Wo, Cblk), jnp.float32)
        for kh in range(K):
            for kw in range(K):
                h0 = ho0 * stride + kh * dilation
                w0 = kw * dilation
                if stride == 1:
                    tap = xpad_ref[pl.ds(h0, rows), pl.ds(w0, Wo), :]
                else:
                    tap = xpad_ref[pl.ds(h0, rows, stride),
                                   pl.ds(w0, Wo, stride), :]
                acc = acc + tap * w_ref[kh * K + kw, :]
        o_ref[0, pl.ds(ho0, rows)] = acc.astype(o_ref.dtype)


def _depthwise_c_lanes(x_nchw, filters, stride, dilation, padding):
    N, C, H, W = x_nchw.shape
    K = filters.shape[-1]
    KK = K * K
    Hp, Wp = H + 2 * padding, W + 2 * padding
    Ho = _out_size(H, padding, dilation, K, stride)
    Wo = _out_size(W, padding, dilation, K, stride)

    # 128 channels per block when possible (full, unmasked 128-lane stores); otherwise
    # the whole channel axis in one block (block dim == full array dim keeps Mosaic's
    # (8, 128) tiling rule satisfied for any C).
    Cblk = 128 if (C % 128 == 0) else C

    itemsize = x_nchw.dtype.itemsize
    per_step = (Cblk * (2 * H * W * itemsize + Hp * Wp * 4 + 2 * Ho * Wo * itemsize)
                + 2 * KK * Cblk * 4)
    vmem_limit = int(min(48 << 20, max(16 << 20, per_step + (8 << 20))))

    # Output-row chunk: ~16 vregs of accumulator, bounded unroll, must divide Ho.
    vregs_per_row = (-(-Wo // 8)) * (-(-Cblk // 128))
    row_chunk = max(1, 16 // vregs_per_row)
    row_chunk = max(row_chunk, -(-Ho // 16))
    row_chunk = min(row_chunk, Ho)
    while Ho % row_chunk:
        row_chunk += 1

    # NHWC presentation of this layer (cheap for the small-spatial / strided layers that
    # are routed here, and it is what makes the output stores lane-dense).
    x_nhwc = jnp.transpose(x_nchw, (0, 2, 3, 1))
    w_kkc = jnp.transpose(filters.astype(jnp.float32).reshape(C, KK), (1, 0))

    kernel = functools.partial(
        _dwconv_c_lanes_kernel, K=K, stride=stride, dilation=dilation, padding=padding,
        H=H, W=W, Hp=Hp, Wp=Wp, Ho=Ho, Wo=Wo, Cblk=Cblk, row_chunk=row_chunk)

    y_nhwc = pl.pallas_call(
        kernel,
        out_shape=jax.ShapeDtypeStruct((N, Ho, Wo, C), x_nchw.dtype),
        grid=(N, C // Cblk),
        in_specs=[
            pl.BlockSpec((1, H, W, Cblk), lambda n, cb: (n, 0, 0, cb)),
            pl.BlockSpec((KK, Cblk), lambda n, cb: (0, cb)),
        ],
        out_specs=pl.BlockSpec((1, Ho, Wo, Cblk), lambda n, cb: (n, 0, 0, cb)),
        scratch_shapes=[pltpu.VMEM((Hp, Wp, Cblk), jnp.float32)],
        compiler_params=pltpu.CompilerParams(
            dimension_semantics=("parallel", "parallel"),
            vmem_limit_bytes=vmem_limit),
    )(x_nhwc, w_kkc)
    return jnp.transpose(y_nhwc, (0, 3, 1, 2))


# --------------------------------- dispatch --------------------------------- #

def depthwise_conv2d_pallas(x_nchw, filters, stride, dilation, padding, layout=None):
    """Grouped conv with groups == in_channels (depthwise), no bias. NCHW in/out.

    x_nchw : (N, C, H, W)
    filters: (C, 1, K, K)   (OIHW with I/groups == 1)
    """
    if layout is None:
        _, C, H, W = x_nchw.shape
        if stride > 1:
            # Keep stride decimation off the lane dim: in the NHWC layout the strided
            # reads only touch the leading (H) and sublane (W) dims.
            # TODO(synk): a lane-strided NCHW variant could serve low-C stride-2 layers
            # with better lane utilization.
            layout = "c_lanes"
        elif H <= 32 and W <= 32 and C >= 64:
            layout = "c_lanes"
        else:
            layout = "w_lanes"
    if layout == "c_lanes":
        return _depthwise_c_lanes(x_nchw, filters, stride, dilation, padding)
    assert stride == 1, "w_lanes path only handles stride 1"
    return _depthwise_w_lanes(x_nchw, filters, dilation, padding)


# ------------------------- module-equivalent wrapper ------------------------ #

class DynamicSeparableConv2dPallas:
    KERNEL_TRANSFORM_MODE = 1

    def __init__(self, max_in_channels, kernel_size_list, stride=1, dilation=1,
                 key=jax.random.PRNGKey(0)):
        self.max_in_channels = max_in_channels
        self.kernel_size_list = kernel_size_list
        self.stride = stride
        self.dilation = dilation

        max_ks = max(kernel_size_list)
        # nn.Conv2d(max_in, max_in, max_ks, groups=max_in, bias=False) weight:
        # shape (max_in_channels, 1, max_ks, max_ks). Deterministic synthetic init.
        self.weight = 0.1 * jax.random.normal(
            key, (max_in_channels, 1, max_ks, max_ks), dtype=jnp.float32)

        self._ks_set = sorted(set(kernel_size_list))
        self.scale_matrices = {}
        if self.KERNEL_TRANSFORM_MODE is not None:
            for i in range(len(self._ks_set) - 1):
                ks_small = self._ks_set[i]
                ks_larger = self._ks_set[i + 1]
                # Parameter(torch.eye(ks_small ** 2))
                self.scale_matrices[f"{ks_larger}to{ks_small}"] = jnp.eye(
                    ks_small ** 2, dtype=jnp.float32)

        self.active_kernel_size = max_ks

    def get_active_filter(self, in_channel, kernel_size):
        out_channel = in_channel
        max_kernel_size = max(self.kernel_size_list)
        start, end = sub_filter_start_end(max_kernel_size, kernel_size)
        filters = self.weight[:out_channel, :in_channel, start:end, start:end]
        if self.KERNEL_TRANSFORM_MODE is not None and kernel_size < max_kernel_size:
            start_filter = self.weight[:out_channel, :in_channel, :, :]
            for i in range(len(self._ks_set) - 1, 0, -1):
                src_ks = self._ks_set[i]
                if src_ks <= kernel_size:
                    break
                target_ks = self._ks_set[i - 1]
                s, e = sub_filter_start_end(src_ks, target_ks)
                _f = start_filter[:, :, s:e, s:e]
                _f = _f.reshape(_f.shape[0], _f.shape[1], -1)
                _f = _f.reshape(-1, _f.shape[2])
                mat = self.scale_matrices[f"{src_ks}to{target_ks}"]
                _f = _f @ mat.T  # F.linear(x, W) == x @ W.T
                _f = _f.reshape(filters.shape[0], filters.shape[1], target_ks ** 2)
                _f = _f.reshape(filters.shape[0], filters.shape[1], target_ks, target_ks)
                start_filter = _f
            filters = start_filter
        return filters

    def __call__(self, x, kernel_size=None):
        if kernel_size is None:
            kernel_size = self.active_kernel_size
        in_channel = x.shape[1]
        filters = self.get_active_filter(in_channel, kernel_size)
        padding = get_same_padding(kernel_size)
        # TODO(synk): MyConv2d.weight_standardization branch not applicable (plain Conv2d here).
        return depthwise_conv2d_pallas(x, filters, self.stride, self.dilation, padding)


# ---------------------------------- main ----------------------------------- #

def _reference_depthwise(x, filters, stride, dilation, padding):
    C = x.shape[1]
    return jax.lax.conv_general_dilated(
        x, filters,
        window_strides=(stride, stride),
        padding=[(padding, padding), (padding, padding)],
        rhs_dilation=(dilation, dilation),
        dimension_numbers=('NCHW', 'OIHW', 'NCHW'),
        feature_group_count=C)


def _check(module, x, kernel_size):
    y = jax.block_until_ready(module(x, kernel_size=kernel_size))
    filters = module.get_active_filter(x.shape[1], kernel_size)
    y_ref = jax.block_until_ready(
        _reference_depthwise(x, filters, module.stride, module.dilation,
                             get_same_padding(kernel_size)))
    assert y.shape == y_ref.shape, (y.shape, y_ref.shape)
    err = jnp.max(jnp.abs(y - y_ref))
    assert jnp.allclose(y, y_ref, atol=1e-4, rtol=1e-4), \
        f"mismatch (ks={kernel_size}, stride={module.stride}): max err {err}"


if __name__ == "__main__":
    key = jax.random.PRNGKey(0)
    k_x1, k_w1, k_w2, k_x3, k_w3 = jax.random.split(key, 5)

    # 1) Small C, stride 1 -> NCHW / W-in-lanes path, all elastic kernel sizes.
    x1 = jax.random.normal(k_x1, (2, 4, 16, 16), dtype=jnp.float32)
    mod1 = DynamicSeparableConv2dPallas(4, [3, 5, 7], stride=1, dilation=1, key=k_w1)
    for ks in (7, 5, 3):
        _check(mod1, x1, ks)

    # 1b) dilation > 1 on the same path.
    mod1d = DynamicSeparableConv2dPallas(4, [3, 5], stride=1, dilation=2, key=k_w1)
    _check(mod1d, x1, 3)

    # 2) Strided conv -> NHWC / C-in-lanes path (decimation on H/W dims only).
    mod2 = DynamicSeparableConv2dPallas(4, [3, 5], stride=2, dilation=1, key=k_w2)
    _check(mod2, x1, 5)
    _check(mod2, x1, 3)

    # 3) Small spatial, wide channels -> NHWC / C-in-lanes path with Cblk=128 (2 blocks).
    x3 = jax.random.normal(k_x3, (2, 256, 8, 8), dtype=jnp.float32)
    mod3 = DynamicSeparableConv2dPallas(256, [3, 5], stride=1, dilation=1, key=k_w3)
    for ks in (5, 3):
        _check(mod3, x3, ks)

    print("KERNEL_OK")
</pallas_src>

<mosaic_0001>
module attributes {stable_mosaic.version = 11 : i64} {
  func.func @_dwconv_w_lanes_kernel(%arg0: i32, %arg1: i32, %arg2: memref<1x4x16x16xf32, #tpu.memory_space<vmem>>, %arg3: memref<196xf32, #tpu.memory_space<smem>>, %arg4: memref<1x4x16x16xf32, #tpu.memory_space<vmem>>, %arg5: memref<22x22xf32, #tpu.memory_space<vmem>>) attributes {dimension_semantics = [#tpu.dimension_semantics<parallel>, #tpu.dimension_semantics<parallel>], iteration_bounds = array<i64: 2, 1>, scalar_prefetch = 0 : i64, scratch_operands = 1 : i64, tpu.core_type = #tpu.core_type<tc>, window_params = [{transform_indices = @transform_0, window_bounds = array<i64: 1, 4, 16, 16>}, {transform_indices = @transform_1, window_bounds = array<i64: 196>}, {transform_indices = @transform_2, window_bounds = array<i64: 1, 4, 16, 16>}]} {
    %cst = arith.constant 0.000000e+00 : f32
    %0 = vector.broadcast %cst : f32 to vector<3x22xf32>
    %c0 = arith.constant 0 : index
    %c0_0 = arith.constant 0 : index
    %1 = vector.load %arg5[%c0, %c0_0] : memref<22x22xf32, #tpu.memory_space<vmem>>, vector<3x22xf32>
    tpu.vector_store %arg5[%c0, %c0_0], %0 {strides = array<i32>} : memref<22x22xf32, #tpu.memory_space<vmem>>, vector<3x22xf32>,
    %cst_1 = arith.constant 0.000000e+00 : f32
    %2 = vector.broadcast %cst_1 : f32 to vector<3x22xf32>
    %c19 = arith.constant 19 : index
    %c0_2 = arith.constant 0 : index
    %3 = vector.load %arg5[%c19, %c0_2] : memref<22x22xf32, #tpu.memory_space<vmem>>, vector<3x22xf32>
    tpu.vector_store %arg5[%c19, %c0_2], %2 {strides = array<i32>} : memref<22x22xf32, #tpu.memory_space<vmem>>, vector<3x22xf32>,
    %cst_3 = arith.constant 0.000000e+00 : f32
    %4 = vector.broadcast %cst_3 : f32 to vector<22x3xf32>
    %c0_4 = arith.constant 0 : index
    %c0_5 = arith.constant 0 : index
    %5 = vector.load %arg5[%c0_4, %c0_5] : memref<22x22xf32, #tpu.memory_space<vmem>>, vector<22x3xf32>
    tpu.vector_store %arg5[%c0_4, %c0_5], %4 {strides = array<i32>} : memref<22x22xf32, #tpu.memory_space<vmem>>, vector<22x3xf32>,
    %cst_6 = arith.constant 0.000000e+00 : f32
    %6 = vector.broadcast %cst_6 : f32 to vector<22x3xf32>
    %c0_7 = arith.constant 0 : index
    %c19_8 = arith.constant 19 : index
    %7 = vector.load %arg5[%c0_7, %c19_8] : memref<22x22xf32, #tpu.memory_space<vmem>>, vector<22x3xf32>
    tpu.vector_store %arg5[%c0_7, %c19_8], %6 {strides = array<i32>} : memref<22x22xf32, #tpu.memory_space<vmem>>, vector<22x3xf32>,
    %c0_i32 = arith.constant 0 : i32
    %c4_i32 = arith.constant 4 : i32
    %8 = arith.addi %c0_i32, %c4_i32 : i32
    %c1_i32 = arith.constant 1 : i32
    scf.for %arg6 = %c0_i32 to %8 step %c1_i32  : i32 {
      %c1_i32_10 = arith.constant 1 : i32
      %9 = arith.muli %arg6, %c1_i32_10 : i32
      %c0_i32_11 = arith.constant 0 : i32
      %10 = arith.addi %c0_i32_11, %9 : i32
      %c0_12 = arith.constant 0 : index
      %11 = arith.index_cast %10 : i32 to index
      %c0_13 = arith.constant 0 : index
      %c0_14 = arith.constant 0 : index
      %12 = vector.load %arg2[%c0_12, %11, %c0_13, %c0_14] : memref<1x4x16x16xf32, #tpu.memory_space<vmem>>, vector<1x1x16x16xf32>
      %13 = vector.shape_cast %12 : vector<1x1x16x16xf32> to vector<16x16xf32>
      %c3 = arith.constant 3 : index
      %c3_15 = arith.constant 3 : index
      %14 = vector.load %arg5[%c3, %c3_15] : memref<22x22xf32, #tpu.memory_space<vmem>>, vector<16x16xf32>
      tpu.vector_store %arg5[%c3, %c3_15], %13 {strides = array<i32>} : memref<22x22xf32, #tpu.memory_space<vmem>>, vector<16x16xf32>,
      %c4_i32_16 = arith.constant 4 : i32
      %15 = arith.muli %arg1, %c4_i32_16 : i32
      %16 = arith.addi %15, %10 : i32
      %c49_i32 = arith.constant 49 : i32
      %17 = arith.muli %16, %c49_i32 : i32
      %cst_17 = arith.constant 0.000000e+00 : f32
      %18 = vector.broadcast %cst_17 : f32 to vector<16x16xf32>
      %c0_18 = arith.constant 0 : index
      %c0_19 = arith.constant 0 : index
      %19 = vector.load %arg5[%c0_18, %c0_19] : memref<22x22xf32, #tpu.memory_space<vmem>>, vector<16x16xf32>
      %c0_i32_20 = arith.constant 0 : i32
      %20 = arith.addi %17, %c0_i32_20 : i32
      %c0_i32_21 = arith.constant 0 : i32
      %21 = arith.addi %20, %c0_i32_21 : i32
      %22 = arith.index_cast %21 : i32 to index
      %23 = memref.load %arg3[%22] : memref<196xf32, #tpu.memory_space<smem>>
      %24 = vector.broadcast %23 : f32 to vector<16x16xf32>
      %25 = arith.mulf %19, %24 : vector<16x16xf32>
      %26 = arith.addf %18, %25 : vector<16x16xf32>
      %c0_22 = arith.constant 0 : index
      %c1 = arith.constant 1 : index
      %27 = vector.load %arg5[%c0_22, %c1] : memref<22x22xf32, #tpu.memory_space<vmem>>, vector<16x16xf32>
      %c0_i32_23 = arith.constant 0 : i32
      %28 = arith.addi %17, %c0_i32_23 : i32
      %c1_i32_24 = arith.constant 1 : i32
      %29 = arith.addi %28, %c1_i32_24 : i32
      %30 = arith.index_cast %29 : i32 to index
      %31 = memref.load %arg3[%30] : memref<196xf32, #tpu.memory_space<smem>>
      %32 = vector.broadcast %31 : f32 to vector<16x16xf32>
      %33 = arith.mulf %27, %32 : vector<16x16xf32>
      %34 = arith.addf %26, %33 : vector<16x16xf32>
      %c0_25 = arith.constant 0 : index
      %c2 = arith.constant 2 : index
      %35 = vector.load %arg5[%c0_25, %c2] : memref<22x22xf32, #tpu.memory_space<vmem>>, vector<16x16xf32>
      %c0_i32_26 = arith.constant 0 : i32
      %36 = arith.addi %17, %c0_i32_26 : i32
      %c2_i32 = arith.constant 2 : i32
      %37 = arith.addi %36, %c2_i32 : i32
      %38 = arith.index_cast %37 : i32 to index
      %39 = memref.load %arg3[%38] : memref<196xf32, #tpu.memory_space<smem>>
      %40 = vector.broadcast %39 : f32 to vector<16x16xf32>
      %41 = arith.mulf %35, %40 : vector<16x16xf32>
      %42 = arith.addf %34, %41 : vector<16x16xf32>
      %c0_27 = arith.constant 0 : index
      %c3_28 = arith.constant 3 : index
      %43 = vector.load %arg5[%c0_27, %c3_28] : memref<22x22xf32, #tpu.memory_space<vmem>>, vector<16x16xf32>
      %c0_i32_29 = arith.constant 0 : i32
      %44 = arith.addi %17, %c0_i32_29 : i32
      %c3_i32 = arith.constant 3 : i32
      %45 = arith.addi %44, %c3_i32 : i32
      %46 = arith.index_cast %45 : i32 to index
      %47 = memref.load %arg3[%46] : memref<196xf32, #tpu.memory_space<smem>>
      %48 = vector.broadcast %47 : f32 to vector<16x16xf32>
      %49 = arith.mulf %43, %48 : vector<16x16xf32>
      %50 = arith.addf %42, %49 : vector<16x16xf32>
      %c0_30 = arith.constant 0 : index
      %c4 = arith.constant 4 : index
      %51 = vector.load %arg5[%c0_30, %c4] : memref<22x22xf32, #tpu.memory_space<vmem>>, vector<16x16xf32>
      %c0_i32_31 = arith.constant 0 : i32
      %52 = arith.addi %17, %c0_i32_31 : i32
      %c4_i32_32 = arith.constant 4 : i32
      %53 = arith.addi %52, %c4_i32_32 : i32
      %54 = arith.index_cast %53 : i32 to index
      %55 = memref.load %arg3[%54] : memref<196xf32, #tpu.memory_space<smem>>
      %56 = vector.broadcast %55 : f32 to vector<16x16xf32>
      %57 = arith.mulf %51, %56 : vector<16x16xf32>
      %58 = arith.addf %50, %57 : vector<16x16xf32>
      %c0_33 = arith.constant 0 : index
      %c5 = arith.constant 5 : index
      %59 = vector.load %arg5[%c0_33, %c5] : memref<22x22xf32, #tpu.memory_space<vmem>>, vector<16x16xf32>
      %c0_i32_34 = arith.constant 0 : i32
      %60 = arith.addi %17, %c0_i32_34 : i32
      %c5_i32 = arith.constant 5 : i32
      %61 = arith.addi %60, %c5_i32 : i32
      %62 = arith.index_cast %61 : i32 to index
      %63 = memref.load %arg3[%62] : memref<196xf32, #tpu.memory_space<smem>>
      %64 = vector.broadcast %63 : f32 to vector<16x16xf32>
      %65 = arith.mulf %59, %64 : vector<16x16xf32>
      %66 = arith.addf %58, %65 : vector<16x16xf32>
      %c0_35 = arith.constant 0 : index
      %c6 = arith.constant 6 : index
      %67 = vector.load %arg5[%c0_35, %c6] : memref<22x22xf32, #tpu.memory_space<vmem>>, vector<16x16xf32>
      %c0_i32_36 = arith.constant 0 : i32
      %68 = arith.addi %17, %c0_i32_36 : i32
      %c6_i32 = arith.constant 6 : i32
      %69 = arith.addi %68, %c6_i32 : i32
      %70 = arith.index_cast %69 : i32 to index
      %71 = memref.load %arg3[%70] : memref<196xf32, #tpu.memory_space<smem>>
      %72 = vector.broadcast %71 : f32 to vector<16x16xf32>
      %73 = arith.mulf %67, %72 : vector<16x16xf32>
      %74 = arith.addf %66, %73 : vector<16x16xf32>
      %c1_37 = arith.constant 1 : index
      %c0_38 = arith.constant 0 : index
      %75 = vector.load %arg5[%c1_37, %c0_38] : memref<22x22xf32, #tpu.memory_space<vmem>>, vector<16x16xf32>
      %c7_i32 = arith.constant 7 : i32
      %76 = arith.addi %17, %c7_i32 : i32
      %c0_i32_39 = arith.constant 0 : i32
      %77 = arith.addi %76, %c0_i32_39 : i32
      %78 = arith.index_cast %77 : i32 to index
      %79 = memref.load %arg3[%78] : memref<196xf32, #tpu.memory_space<smem>>
      %80 = vector.broadcast %79 : f32 to vector<16x16xf32>
      %81 = arith.mulf %75, %80 : vector<16x16xf32>
      %82 = arith.addf %74, %81 : vector<16x16xf32>
      %c1_40 = arith.constant 1 : index
      %c1_41 = arith.constant 1 : index
      %83 = vector.load %arg5[%c1_40, %c1_41] : memref<22x22xf32, #tpu.memory_space<vmem>>, vector<16x16xf32>
      %c7_i32_42 = arith.constant 7 : i32
      %84 = arith.addi %17, %c7_i32_42 : i32
      %c1_i32_43 = arith.constant 1 : i32
      %85 = arith.addi %84, %c1_i32_43 : i32
      %86 = arith.index_cast %85 : i32 to index
      %87 = memref.load %arg3[%86] : memref<196xf32, #tpu.memory_space<smem>>
      %88 = vector.broadcast %87 : f32 to vector<16x16xf32>
      %89 = arith.mulf %83, %88 : vector<16x16xf32>
      %90 = arith.addf %82, %89 : vector<16x16xf32>
      %c1_44 = arith.constant 1 : index
      %c2_45 = arith.constant 2 : index
      %91 = vector.load %arg5[%c1_44, %c2_45] : memref<22x22xf32, #tpu.memory_space<vmem>>, vector<16x16xf32>
      %c7_i32_46 = arith.constant 7 : i32
      %92 = arith.addi %17, %c7_i32_46 : i32
      %c2_i32_47 = arith.constant 2 : i32
      %93 = arith.addi %92, %c2_i32_47 : i32
      %94 = arith.index_cast %93 : i32 to index
      %95 = memref.load %arg3[%94] : memref<196xf32, #tpu.memory_space<smem>>
      %96 = vector.broadcast %95 : f32 to vector<16x16xf32>
      %97 = arith.mulf %91, %96 : vector<16x16xf32>
      %98 = arith.addf %90, %97 : vector<16x16xf32>
      %c1_48 = arith.constant 1 : index
      %c3_49 = arith.constant 3 : index
      %99 = vector.load %arg5[%c1_48, %c3_49] : memref<22x22xf32, #tpu.memory_space<vmem>>, vector<16x16xf32>
      %c7_i32_50 = arith.constant 7 : i32
      %100 = arith.addi %17, %c7_i32_50 : i32
      %c3_i32_51 = arith.constant 3 : i32
      %101 = arith.addi %100, %c3_i32_51 : i32
      %102 = arith.index_cast %101 : i32 to index
      %103 = memref.load %arg3[%102] : memref<196xf32, #tpu.memory_space<smem>>
      %104 = vector.broadcast %103 : f32 to vector<16x16xf32>
      %105 = arith.mulf %99, %104 : vector<16x16xf32>
      %106 = arith.addf %98, %105 : vector<16x16xf32>
      %c1_52 = arith.constant 1 : index
      %c4_53 = arith.constant 4 : index
      %107 = vector.load %arg5[%c1_52, %c4_53] : memref<22x22xf32, #tpu.memory_space<vmem>>, vector<16x16xf32>
      %c7_i32_54 = arith.constant 7 : i32
      %108 = arith.addi %17, %c7_i32_54 : i32
      %c4_i32_55 = arith.constant 4 : i32
      %109 = arith.addi %108, %c4_i32_55 : i32
      %110 = arith.index_cast %109 : i32 to index
      %111 = memref.load %arg3[%110] : memref<196xf32, #tpu.memory_space<smem>>
      %112 = vector.broadcast %111 : f32 to vector<16x16xf32>
      %113 = arith.mulf %107, %112 : vector<16x16xf32>
      %114 = arith.addf %106, %113 : vector<16x16xf32>
      %c1_56 = arith.constant 1 : index
      %c5_57 = arith.constant 5 : index
      %115 = vector.load %arg5[%c1_56, %c5_57] : memref<22x22xf32, #tpu.memory_space<vmem>>, vector<16x16xf32>
      %c7_i32_58 = arith.constant 7 : i32
      %116 = arith.addi %17, %c7_i32_58 : i32
      %c5_i32_59 = arith.constant 5 : i32
      %117 = arith.addi %116, %c5_i32_59 : i32
      %118 = arith.index_cast %117 : i32 to index
      %119 = memref.load %arg3[%118] : memref<196xf32, #tpu.memory_space<smem>>
      %120 = vector.broadcast %119 : f32 to vector<16x16xf32>
      %121 = arith.mulf %115, %120 : vector<16x16xf32>
      %122 = arith.addf %114, %121 : vector<16x16xf32>
      %c1_60 = arith.constant 1 : index
      %c6_61 = arith.constant 6 : index
      %123 = vector.load %arg5[%c1_60, %c6_61] : memref<22x22xf32, #tpu.memory_space<vmem>>, vector<16x16xf32>
      %c7_i32_62 = arith.constant 7 : i32
      %124 = arith.addi %17, %c7_i32_62 : i32
      %c6_i32_63 = arith.constant 6 : i32
      %125 = arith.addi %124, %c6_i32_63 : i32
      %126 = arith.index_cast %125 : i32 to index
      %127 = memref.load %arg3[%126] : memref<196xf32, #tpu.memory_space<smem>>
      %128 = vector.broadcast %127 : f32 to vector<16x16xf32>
      %129 = arith.mulf %123, %128 : vector<16x16xf32>
      %130 = arith.addf %122, %129 : vector<16x16xf32>
      %c2_64 = arith.constant 2 : index
      %c0_65 = arith.constant 0 : index
      %131 = vector.load %arg5[%c2_64, %c0_65] : memref<22x22xf32, #tpu.memory_space<vmem>>, vector<16x16xf32>
      %c14_i32 = arith.constant 14 : i32
      %132 = arith.addi %17, %c14_i32 : i32
      %c0_i32_66 = arith.constant 0 : i32
      %133 = arith.addi %132, %c0_i32_66 : i32
      %134 = arith.index_cast %133 : i32 to index
      %135 = memref.load %arg3[%134] : memref<196xf32, #tpu.memory_space<smem>>
      %136 = vector.broadcast %135 : f32 to vector<16x16xf32>
      %137 = arith.mulf %131, %136 : vector<16x16xf32>
      %138 = arith.addf %130, %137 : vector<16x16xf32>
      %c2_67 = arith.constant 2 : index
      %c1_68 = arith.constant 1 : index
      %139 = vector.load %arg5[%c2_67, %c1_68] : memref<22x22xf32, #tpu.memory_space<vmem>>, vector<16x16xf32>
      %c14_i32_69 = arith.constant 14 : i32
      %140 = arith.addi %17, %c14_i32_69 : i32
      %c1_i32_70 = arith.constant 1 : i32
      %141 = arith.addi %140, %c1_i32_70 : i32
      %142 = arith.index_cast %141 : i32 to index
      %143 = memref.load %arg3[%142] : memref<196xf32, #tpu.memory_space<smem>>
      %144 = vector.broadcast %143 : f32 to vector<16x16xf32>
      %145 = arith.mulf %139, %144 : vector<16x16xf32>
      %146 = arith.addf %138, %145 : vector<16x16xf32>
      %c2_71 = arith.constant 2 : index
      %c2_72 = arith.constant 2 : index
      %147 = vector.load %arg5[%c2_71, %c2_72] : memref<22x22xf32, #tpu.memory_space<vmem>>, vector<16x16xf32>
      %c14_i32_73 = arith.constant 14 : i32
      %148 = arith.addi %17, %c14_i32_73 : i32
      %c2_i32_74 = arith.constant 2 : i32
      %149 = arith.addi %148, %c2_i32_74 : i32
      %150 = arith.index_cast %149 : i32 to index
      %151 = memref.load %arg3[%150] : memref<196xf32, #tpu.memory_space<smem>>
      %152 = vector.broadcast %151 : f32 to vector<16x16xf32>
      %153 = arith.mulf %147, %152 : vector<16x16xf32>
      %154 = arith.addf %146, %153 : vector<16x16xf32>
      %c2_75 = arith.constant 2 : index
      %c3_76 = arith.constant 3 : index
      %155 = vector.load %arg5[%c2_75, %c3_76] : memref<22x22xf32, #tpu.memory_space<vmem>>, vector<16x16xf32>
      %c14_i32_77 = arith.constant 14 : i32
      %156 = arith.addi %17, %c14_i32_77 : i32
      %c3_i32_78 = arith.constant 3 : i32
      %157 = arith.addi %156, %c3_i32_78 : i32
      %158 = arith.index_cast %157 : i32 to index
      %159 = memref.load %arg3[%158] : memref<196xf32, #tpu.memory_space<smem>>
      %160 = vector.broadcast %159 : f32 to vector<16x16xf32>
      %161 = arith.mulf %155, %160 : vector<16x16xf32>
      %162 = arith.addf %154, %161 : vector<16x16xf32>
      %c2_79 = arith.constant 2 : index
      %c4_80 = arith.constant 4 : index
      %163 = vector.load %arg5[%c2_79, %c4_80] : memref<22x22xf32, #tpu.memory_space<vmem>>, vector<16x16xf32>
      %c14_i32_81 = arith.constant 14 : i32
      %164 = arith.addi %17, %c14_i32_81 : i32
      %c4_i32_82 = arith.constant 4 : i32
      %165 = arith.addi %164, %c4_i32_82 : i32
      %166 = arith.index_cast %165 : i32 to index
      %167 = memref.load %arg3[%166] : memref<196xf32, #tpu.memory_space<smem>>
      %168 = vector.broadcast %167 : f32 to vector<16x16xf32>
      %169 = arith.mulf %163, %168 : vector<16x16xf32>
      %170 = arith.addf %162, %169 : vector<16x16xf32>
      %c2_83 = arith.constant 2 : index
      %c5_84 = arith.constant 5 : index
      %171 = vector.load %arg5[%c2_83, %c5_84] : memref<22x22xf32, #tpu.memory_space<vmem>>, vector<16x16xf32>
      %c14_i32_85 = arith.constant 14 : i32
      %172 = arith.addi %17, %c14_i32_85 : i32
      %c5_i32_86 = arith.constant 5 : i32
      %173 = arith.addi %172, %c5_i32_86 : i32
      %174 = arith.index_cast %173 : i32 to index
      %175 = memref.load %arg3[%174] : memref<196xf32, #tpu.memory_space<smem>>
      %176 = vector.broadcast %175 : f32 to vector<16x16xf32>
      %177 = arith.mulf %171, %176 : vector<16x16xf32>
      %178 = arith.addf %170, %177 : vector<16x16xf32>
      %c2_87 = arith.constant 2 : index
      %c6_88 = arith.constant 6 : index
      %179 = vector.load %arg5[%c2_87, %c6_88] : memref<22x22xf32, #tpu.memory_space<vmem>>, vector<16x16xf32>
      %c14_i32_89 = arith.constant 14 : i32
      %180 = arith.addi %17, %c14_i32_89 : i32
      %c6_i32_90 = arith.constant 6 : i32
      %181 = arith.addi %180, %c6_i32_90 : i32
      %182 = arith.index_cast %181 : i32 to index
      %183 = memref.load %arg3[%182] : memref<196xf32, #tpu.memory_space<smem>>
      %184 = vector.broadcast %183 : f32 to vector<16x16xf32>
      %185 = arith.mulf %179, %184 : vector<16x16xf32>
      %186 = arith.addf %178, %185 : vector<16x16xf32>
      %c3_91 = arith.constant 3 : index
      %c0_92 = arith.constant 0 : index
      %187 = vector.load %arg5[%c3_91, %c0_92] : memref<22x22xf32, #tpu.memory_space<vmem>>, vector<16x16xf32>
      %c21_i32 = arith.constant 21 : i32
      %188 = arith.addi %17, %c21_i32 : i32
      %c0_i32_93 = arith.constant 0 : i32
      %189 = arith.addi %188, %c0_i32_93 : i32
      %190 = arith.index_cast %189 : i32 to index
      %191 = memref.load %arg3[%190] : memref<196xf32, #tpu.memory_space<smem>>
      %192 = vector.broadcast %191 : f32 to vector<16x16xf32>
      %193 = arith.mulf %187, %192 : vector<16x16xf32>
      %194 = arith.addf %186, %193 : vector<16x16xf32>
      %c3_94 = arith.constant 3 : index
      %c1_95 = arith.constant 1 : index
      %195 = vector.load %arg5[%c3_94, %c1_95] : memref<22x22xf32, #tpu.memory_space<vmem>>, vector<16x16xf32>
      %c21_i32_96 = arith.constant 21 : i32
      %196 = arith.addi %17, %c21_i32_96 : i32
      %c1_i32_97 = arith.constant 1 : i32
      %197 = arith.addi %196, %c1_i32_97 : i32
      %198 = arith.index_cast %197 : i32 to index
      %199 = memref.load %arg3[%198] : memref<196xf32, #tpu.memory_space<smem>>
      %200 = vector.broadcast %199 : f32 to vector<16x16xf32>
      %201 = arith.mulf %195, %200 : vector<16x16xf32>
      %202 = arith.addf %194, %201 : vector<16x16xf32>
      %c3_98 = arith.constant 3 : index
      %c2_99 = arith.constant 2 : index
      %203 = vector.load %arg5[%c3_98, %c2_99] : memref<22x22xf32, #tpu.memory_space<vmem>>, vector<16x16xf32>
      %c21_i32_100 = arith.constant 21 : i32
      %204 = arith.addi %17, %c21_i32_100 : i32
      %c2_i32_101 = arith.constant 2 : i32
      %205 = arith.addi %204, %c2_i32_101 : i32
      %206 = arith.index_cast %205 : i32 to index
      %207 = memref.load %arg3[%206] : memref<196xf32, #tpu.memory_space<smem>>
      %208 = vector.broadcast %207 : f32 to vector<16x16xf32>
      %209 = arith.mulf %203, %208 : vector<16x16xf32>
      %210 = arith.addf %202, %209 : vector<16x16xf32>
      %c3_102 = arith.constant 3 : index
      %c3_103 = arith.constant 3 : index
      %211 = vector.load %arg5[%c3_102, %c3_103] : memref<22x22xf32, #tpu.memory_space<vmem>>, vector<16x16xf32>
      %c21_i32_104 = arith.constant 21 : i32
      %212 = arith.addi %17, %c21_i32_104 : i32
      %c3_i32_105 = arith.constant 3 : i32
      %213 = arith.addi %212, %c3_i32_105 : i32
      %214 = arith.index_cast %213 : i32 to index
      %215 = memref.load %arg3[%214] : memref<196xf32, #tpu.memory_space<smem>>
      %216 = vector.broadcast %215 : f32 to vector<16x16xf32>
      %217 = arith.mulf %211, %216 : vector<16x16xf32>
      %218 = arith.addf %210, %217 : vector<16x16xf32>
      %c3_106 = arith.constant 3 : index
      %c4_107 = arith.constant 4 : index
      %219 = vector.load %arg5[%c3_106, %c4_107] : memref<22x22xf32, #tpu.memory_space<vmem>>, vector<16x16xf32>
      %c21_i32_108 = arith.constant 21 : i32
      %220 = arith.addi %17, %c21_i32_108 : i32
      %c4_i32_109 = arith.constant 4 : i32
      %221 = arith.addi %220, %c4_i32_109 : i32
      %222 = arith.index_cast %221 : i32 to index
      %223 = memref.load %arg3[%222] : memref<196xf32, #tpu.memory_space<smem>>
      %224 = vector.broadcast %223 : f32 to vector<16x16xf32>
      %225 = arith.mulf %219, %224 : vector<16x16xf32>
      %226 = arith.addf %218, %225 : vector<16x16xf32>
      %c3_110 = arith.constant 3 : index
      %c5_111 = arith.constant 5 : index
      %227 = vector.load %arg5[%c3_110, %c5_111] : memref<22x22xf32, #tpu.memory_space<vmem>>, vector<16x16xf32>
      %c21_i32_112 = arith.constant 21 : i32
      %228 = arith.addi %17, %c21_i32_112 : i32
      %c5_i32_113 = arith.constant 5 : i32
      %229 = arith.addi %228, %c5_i32_113 : i32
      %230 = arith.index_cast %229 : i32 to index
      %231 = memref.load %arg3[%230] : memref<196xf32, #tpu.memory_space<smem>>
      %232 = vector.broadcast %231 : f32 to vector<16x16xf32>
      %233 = arith.mulf %227, %232 : vector<16x16xf32>
      %234 = arith.addf %226, %233 : vector<16x16xf32>
      %c3_114 = arith.constant 3 : index
      %c6_115 = arith.constant 6 : index
      %235 = vector.load %arg5[%c3_114, %c6_115] : memref<22x22xf32, #tpu.memory_space<vmem>>, vector<16x16xf32>
      %c21_i32_116 = arith.constant 21 : i32
      %236 = arith.addi %17, %c21_i32_116 : i32
      %c6_i32_117 = arith.constant 6 : i32
      %237 = arith.addi %236, %c6_i32_117 : i32
      %238 = arith.index_cast %237 : i32 to index
      %239 = memref.load %arg3[%238] : memref<196xf32, #tpu.memory_space<smem>>
      %240 = vector.broadcast %239 : f32 to vector<16x16xf32>
      %241 = arith.mulf %235, %240 : vector<16x16xf32>
      %242 = arith.addf %234, %241 : vector<16x16xf32>
      %c4_118 = arith.constant 4 : index
      %c0_119 = arith.constant 0 : index
      %243 = vector.load %arg5[%c4_118, %c0_119] : memref<22x22xf32, #tpu.memory_space<vmem>>, vector<16x16xf32>
      %c28_i32 = arith.constant 28 : i32
      %244 = arith.addi %17, %c28_i32 : i32
      %c0_i32_120 = arith.constant 0 : i32
      %245 = arith.addi %244, %c0_i32_120 : i32
      %246 = arith.index_cast %245 : i32 to index
      %247 = memref.load %arg3[%246] : memref<196xf32, #tpu.memory_space<smem>>
      %248 = vector.broadcast %247 : f32 to vector<16x16xf32>
      %249 = arith.mulf %243, %248 : vector<16x16xf32>
      %250 = arith.addf %242, %249 : vector<16x16xf32>
      %c4_121 = arith.constant 4 : index
      %c1_122 = arith.constant 1 : index
      %251 = vector.load %arg5[%c4_121, %c1_122] : memref<22x22xf32, #tpu.memory_space<vmem>>, vector<16x16xf32>
      %c28_i32_123 = arith.constant 28 : i32
      %252 = arith.addi %17, %c28_i32_123 : i32
      %c1_i32_124 = arith.constant 1 : i32
      %253 = arith.addi %252, %c1_i32_124 : i32
      %254 = arith.index_cast %253 : i32 to index
      %255 = memref.load %arg3[%254] : memref<196xf32, #tpu.memory_space<smem>>
      %256 = vector.broadcast %255 : f32 to vector<16x16xf32>
      %257 = arith.mulf %251, %256 : vector<16x16xf32>
      %258 = arith.addf %250, %257 : vector<16x16xf32>
      %c4_125 = arith.constant 4 : index
      %c2_126 = arith.constant 2 : index
      %259 = vector.load %arg5[%c4_125, %c2_126] : memref<22x22xf32, #tpu.memory_space<vmem>>, vector<16x16xf32>
      %c28_i32_127 = arith.constant 28 : i32
      %260 = arith.addi %17, %c28_i32_127 : i32
      %c2_i32_128 = arith.constant 2 : i32
      %261 = arith.addi %260, %c2_i32_128 : i32
      %262 = arith.index_cast %261 : i32 to index
      %263 = memref.load %arg3[%262] : memref<196xf32, #tpu.memory_space<smem>>
      %264 = vector.broadcast %263 : f32 to vector<16x16xf32>
      %265 = arith.mulf %259, %264 : vector<16x16xf32>
      %266 = arith.addf %258, %265 : vector<16x16xf32>
      %c4_129 = arith.constant 4 : index
      %c3_130 = arith.constant 3 : index
      %267 = vector.load %arg5[%c4_129, %c3_130] : memref<22x22xf32, #tpu.memory_space<vmem>>, vector<16x16xf32>
      %c28_i32_131 = arith.constant 28 : i32
      %268 = arith.addi %17, %c28_i32_131 : i32
      %c3_i32_132 = arith.constant 3 : i32
      %269 = arith.addi %268, %c3_i32_132 : i32
      %270 = arith.index_cast %269 : i32 to index
      %271 = memref.load %arg3[%270] : memref<196xf32, #tpu.memory_space<smem>>
      %272 = vector.broadcast %271 : f32 to vector<16x16xf32>
      %273 = arith.mulf %267, %272 : vector<16x16xf32>
      %274 = arith.addf %266, %273 : vector<16x16xf32>
      %c4_133 = arith.constant 4 : index
      %c4_134 = arith.constant 4 : index
      %275 = vector.load %arg5[%c4_133, %c4_134] : memref<22x22xf32, #tpu.memory_space<vmem>>, vector<16x16xf32>
      %c28_i32_135 = arith.constant 28 : i32
      %276 = arith.addi %17, %c28_i32_135 : i32
      %c4_i32_136 = arith.constant 4 : i32
      %277 = arith.addi %276, %c4_i32_136 : i32
      %278 = arith.index_cast %277 : i32 to index
      %279 = memref.load %arg3[%278] : memref<196xf32, #tpu.memory_space<smem>>
      %280 = vector.broadcast %279 : f32 to vector<16x16xf32>
      %281 = arith.mulf %275, %280 : vector<16x16xf32>
      %282 = arith.addf %274, %281 : vector<16x16xf32>
      %c4_137 = arith.constant 4 : index
      %c5_138 = arith.constant 5 : index
      %283 = vector.load %arg5[%c4_137, %c5_138] : memref<22x22xf32, #tpu.memory_space<vmem>>, vector<16x16xf32>
      %c28_i32_139 = arith.constant 28 : i32
      %284 = arith.addi %17, %c28_i32_139 : i32
      %c5_i32_140 = arith.constant 5 : i32
      %285 = arith.addi %284, %c5_i32_140 : i32
      %286 = arith.index_cast %285 : i32 to index
      %287 = memref.load %arg3[%286] : memref<196xf32, #tpu.memory_space<smem>>
      %288 = vector.broadcast %287 : f32 to vector<16x16xf32>
      %289 = arith.mulf %283, %288 : vector<16x16xf32>
      %290 = arith.addf %282, %289 : vector<16x16xf32>
      %c4_141 = arith.constant 4 : index
      %c6_142 = arith.constant 6 : index
      %291 = vector.load %arg5[%c4_141, %c6_142] : memref<22x22xf32, #tpu.memory_space<vmem>>, vector<16x16xf32>
      %c28_i32_143 = arith.constant 28 : i32
      %292 = arith.addi %17, %c28_i32_143 : i32
      %c6_i32_144 = arith.constant 6 : i32
      %293 = arith.addi %292, %c6_i32_144 : i32
      %294 = arith.index_cast %293 : i32 to index
      %295 = memref.load %arg3[%294] : memref<196xf32, #tpu.memory_space<smem>>
      %296 = vector.broadcast %295 : f32 to vector<16x16xf32>
      %297 = arith.mulf %291, %296 : vector<16x16xf32>
      %298 = arith.addf %290, %297 : vector<16x16xf32>
      %c5_145 = arith.constant 5 : index
      %c0_146 = arith.constant 0 : index
      %299 = vector.load %arg5[%c5_145, %c0_146] : memref<22x22xf32, #tpu.memory_space<vmem>>, vector<16x16xf32>
      %c35_i32 = arith.constant 35 : i32
      %300 = arith.addi %17, %c35_i32 : i32
      %c0_i32_147 = arith.constant 0 : i32
      %301 = arith.addi %300, %c0_i32_147 : i32
      %302 = arith.index_cast %301 : i32 to index
      %303 = memref.load %arg3[%302] : memref<196xf32, #tpu.memory_space<smem>>
      %304 = vector.broadcast %303 : f32 to vector<16x16xf32>
      %305 = arith.mulf %299, %304 : vector<16x16xf32>
      %306 = arith.addf %298, %305 : vector<16x16xf32>
      %c5_148 = arith.constant 5 : index
      %c1_149 = arith.constant 1 : index
      %307 = vector.load %arg5[%c5_148, %c1_149] : memref<22x22xf32, #tpu.memory_space<vmem>>, vector<16x16xf32>
      %c35_i32_150 = arith.constant 35 : i32
      %308 = arith.addi %17, %c35_i32_150 : i32
      %c1_i32_151 = arith.constant 1 : i32
      %309 = arith.addi %308, %c1_i32_151 : i32
      %310 = arith.index_cast %309 : i32 to index
      %311 = memref.load %arg3[%310] : memref<196xf32, #tpu.memory_space<smem>>
      %312 = vector.broadcast %311 : f32 to vector<16x16xf32>
      %313 = arith.mulf %307, %312 : vector<16x16xf32>
      %314 = arith.addf %306, %313 : vector<16x16xf32>
      %c5_152 = arith.constant 5 : index
      %c2_153 = arith.constant 2 : index
      %315 = vector.load %arg5[%c5_152, %c2_153] : memref<22x22xf32, #tpu.memory_space<vmem>>, vector<16x16xf32>
      %c35_i32_154 = arith.constant 35 : i32
      %316 = arith.addi %17, %c35_i32_154 : i32
      %c2_i32_155 = arith.constant 2 : i32
      %317 = arith.addi %316, %c2_i32_155 : i32
      %318 = arith.index_cast %317 : i32 to index
      %319 = memref.load %arg3[%318] : memref<196xf32, #tpu.memory_space<smem>>
      %320 = vector.broadcast %319 : f32 to vector<16x16xf32>
      %321 = arith.mulf %315, %320 : vector<16x16xf32>
      %322 = arith.addf %314, %321 : vector<16x16xf32>
      %c5_156 = arith.constant 5 : index
      %c3_157 = arith.constant 3 : index
      %323 = vector.load %arg5[%c5_156, %c3_157] : memref<22x22xf32, #tpu.memory_space<vmem>>, vector<16x16xf32>
      %c35_i32_158 = arith.constant 35 : i32
      %324 = arith.addi %17, %c35_i32_158 : i32
      %c3_i32_159 = arith.constant 3 : i32
      %325 = arith.addi %324, %c3_i32_159 : i32
      %326 = arith.index_cast %325 : i32 to index
      %327 = memref.load %arg3[%326] : memref<196xf32, #tpu.memory_space<smem>>
      %328 = vector.broadcast %327 : f32 to vector<16x16xf32>
      %329 = arith.mulf %323, %328 : vector<16x16xf32>
      %330 = arith.addf %322, %329 : vector<16x16xf32>
      %c5_160 = arith.constant 5 : index
      %c4_161 = arith.constant 4 : index
      %331 = vector.load %arg5[%c5_160, %c4_161] : memref<22x22xf32, #tpu.memory_space<vmem>>, vector<16x16xf32>
      %c35_i32_162 = arith.constant 35 : i32
      %332 = arith.addi %17, %c35_i32_162 : i32
      %c4_i32_163 = arith.constant 4 : i32
      %333 = arith.addi %332, %c4_i32_163 : i32
      %334 = arith.index_cast %333 : i32 to index
      %335 = memref.load %arg3[%334] : memref<196xf32, #tpu.memory_space<smem>>
      %336 = vector.broadcast %335 : f32 to vector<16x16xf32>
      %337 = arith.mulf %331, %336 : vector<16x16xf32>
      %338 = arith.addf %330, %337 : vector<16x16xf32>
      %c5_164 = arith.constant 5 : index
      %c5_165 = arith.constant 5 : index
      %339 = vector.load %arg5[%c5_164, %c5_165] : memref<22x22xf32, #tpu.memory_space<vmem>>, vector<16x16xf32>
      %c35_i32_166 = arith.constant 35 : i32
      %340 = arith.addi %17, %c35_i32_166 : i32
      %c5_i32_167 = arith.constant 5 : i32
      %341 = arith.addi %340, %c5_i32_167 : i32
      %342 = arith.index_cast %341 : i32 to index
      %343 = memref.load %arg3[%342] : memref<196xf32, #tpu.memory_space<smem>>
      %344 = vector.broadcast %343 : f32 to vector<16x16xf32>
      %345 = arith.mulf %339, %344 : vector<16x16xf32>
      %346 = arith.addf %338, %345 : vector<16x16xf32>
      %c5_168 = arith.constant 5 : index
      %c6_169 = arith.constant 6 : index
      %347 = vector.load %arg5[%c5_168, %c6_169] : memref<22x22xf32, #tpu.memory_space<vmem>>, vector<16x16xf32>
      %c35_i32_170 = arith.constant 35 : i32
      %348 = arith.addi %17, %c35_i32_170 : i32
      %c6_i32_171 = arith.constant 6 : i32
      %349 = arith.addi %348, %c6_i32_171 : i32
      %350 = arith.index_cast %349 : i32 to index
      %351 = memref.load %arg3[%350] : memref<196xf32, #tpu.memory_space<smem>>
      %352 = vector.broadcast %351 : f32 to vector<16x16xf32>
      %353 = arith.mulf %347, %352 : vector<16x16xf32>
      %354 = arith.addf %346, %353 : vector<16x16xf32>
      %c6_172 = arith.constant 6 : index
      %c0_173 = arith.constant 0 : index
      %355 = vector.load %arg5[%c6_172, %c0_173] : memref<22x22xf32, #tpu.memory_space<vmem>>, vector<16x16xf32>
      %c42_i32 = arith.constant 42 : i32
      %356 = arith.addi %17, %c42_i32 : i32
      %c0_i32_174 = arith.constant 0 : i32
      %357 = arith.addi %356, %c0_i32_174 : i32
      %358 = arith.index_cast %357 : i32 to index
      %359 = memref.load %arg3[%358] : memref<196xf32, #tpu.memory_space<smem>>
      %360 = vector.broadcast %359 : f32 to vector<16x16xf32>
      %361 = arith.mulf %355, %360 : vector<16x16xf32>
      %362 = arith.addf %354, %361 : vector<16x16xf32>
      %c6_175 = arith.constant 6 : index
      %c1_176 = arith.constant 1 : index
      %363 = vector.load %arg5[%c6_175, %c1_176] : memref<22x22xf32, #tpu.memory_space<vmem>>, vector<16x16xf32>
      %c42_i32_177 = arith.constant 42 : i32
      %364 = arith.addi %17, %c42_i32_177 : i32
      %c1_i32_178 = arith.constant 1 : i32
      %365 = arith.addi %364, %c1_i32_178 : i32
      %366 = arith.index_cast %365 : i32 to index
      %367 = memref.load %arg3[%366] : memref<196xf32, #tpu.memory_space<smem>>
      %368 = vector.broadcast %367 : f32 to vector<16x16xf32>
      %369 = arith.mulf %363, %368 : vector<16x16xf32>
      %370 = arith.addf %362, %369 : vector<16x16xf32>
      %c6_179 = arith.constant 6 : index
      %c2_180 = arith.constant 2 : index
      %371 = vector.load %arg5[%c6_179, %c2_180] : memref<22x22xf32, #tpu.memory_space<vmem>>, vector<16x16xf32>
      %c42_i32_181 = arith.constant 42 : i32
      %372 = arith.addi %17, %c42_i32_181 : i32
      %c2_i32_182 = arith.constant 2 : i32
      %373 = arith.addi %372, %c2_i32_182 : i32
      %374 = arith.index_cast %373 : i32 to index
      %375 = memref.load %arg3[%374] : memref<196xf32, #tpu.memory_space<smem>>
      %376 = vector.broadcast %375 : f32 to vector<16x16xf32>
      %377 = arith.mulf %371, %376 : vector<16x16xf32>
      %378 = arith.addf %370, %377 : vector<16x16xf32>
      %c6_183 = arith.constant 6 : index
      %c3_184 = arith.constant 3 : index
      %379 = vector.load %arg5[%c6_183, %c3_184] : memref<22x22xf32, #tpu.memory_space<vmem>>, vector<16x16xf32>
      %c42_i32_185 = arith.constant 42 : i32
      %380 = arith.addi %17, %c42_i32_185 : i32
      %c3_i32_186 = arith.constant 3 : i32
      %381 = arith.addi %380, %c3_i32_186 : i32
      %382 = arith.index_cast %381 : i32 to index
      %383 = memref.load %arg3[%382] : memref<196xf32, #tpu.memory_space<smem>>
      %384 = vector.broadcast %383 : f32 to vector<16x16xf32>
      %385 = arith.mulf %379, %384 : vector<16x16xf32>
      %386 = arith.addf %378, %385 : vector<16x16xf32>
      %c6_187 = arith.constant 6 : index
      %c4_188 = arith.constant 4 : index
      %387 = vector.load %arg5[%c6_187, %c4_188] : memref<22x22xf32, #tpu.memory_space<vmem>>, vector<16x16xf32>
      %c42_i32_189 = arith.constant 42 : i32
      %388 = arith.addi %17, %c42_i32_189 : i32
      %c4_i32_190 = arith.constant 4 : i32
      %389 = arith.addi %388, %c4_i32_190 : i32
      %390 = arith.index_cast %389 : i32 to index
      %391 = memref.load %arg3[%390] : memref<196xf32, #tpu.memory_space<smem>>
      %392 = vector.broadcast %391 : f32 to vector<16x16xf32>
      %393 = arith.mulf %387, %392 : vector<16x16xf32>
      %394 = arith.addf %386, %393 : vector<16x16xf32>
      %c6_191 = arith.constant 6 : index
      %c5_192 = arith.constant 5 : index
      %395 = vector.load %arg5[%c6_191, %c5_192] : memref<22x22xf32, #tpu.memory_space<vmem>>, vector<16x16xf32>
      %c42_i32_193 = arith.constant 42 : i32
      %396 = arith.addi %17, %c42_i32_193 : i32
      %c5_i32_194 = arith.constant 5 : i32
      %397 = arith.addi %396, %c5_i32_194 : i32
      %398 = arith.index_cast %397 : i32 to index
      %399 = memref.load %arg3[%398] : memref<196xf32, #tpu.memory_space<smem>>
      %400 = vector.broadcast %399 : f32 to vector<16x16xf32>
      %401 = arith.mulf %395, %400 : vector<16x16xf32>
      %402 = arith.addf %394, %401 : vector<16x16xf32>
      %c6_195 = arith.constant 6 : index
      %c6_196 = arith.constant 6 : index
      %403 = vector.load %arg5[%c6_195, %c6_196] : memref<22x22xf32, #tpu.memory_space<vmem>>, vector<16x16xf32>
      %c42_i32_197 = arith.constant 42 : i32
      %404 = arith.addi %17, %c42_i32_197 : i32
      %c6_i32_198 = arith.constant 6 : i32
      %405 = arith.addi %404, %c6_i32_198 : i32
      %406 = arith.index_cast %405 : i32 to index
      %407 = memref.load %arg3[%406] : memref<196xf32, #tpu.memory_space<smem>>
      %408 = vector.broadcast %407 : f32 to vector<16x16xf32>
      %409 = arith.mulf %403, %408 : vector<16x16xf32>
      %410 = arith.addf %402, %409 : vector<16x16xf32>
      %c0_199 = arith.constant 0 : index
      %411 = arith.index_cast %10 : i32 to index
      %c0_200 = arith.constant 0 : index
      %c0_201 = arith.constant 0 : index
      %412 = vector.load %arg4[%c0_199, %411, %c0_200, %c0_201] : memref<1x4x16x16xf32, #tpu.memory_space<vmem>>, vector<1x1x16x16xf32>
      %413 = vector.shape_cast %412 : vector<1x1x16x16xf32> to vector<16x16xf32>
      %414 = vector.shape_cast %410 : vector<16x16xf32> to vector<1x1x16x16xf32>
      tpu.vector_store %arg4[%c0_199, %411, %c0_200, %c0_201], %414 {strides = array<i32>} : memref<1x4x16x16xf32, #tpu.memory_space<vmem>>, vector<1x1x16x16xf32>,
    }
    %c4_i32_9 = arith.constant 4 : i32
    return
  }
  func.func @transform_0(%arg0: i32, %arg1: i32) -> (i32, i32, i32, i32) {
    %c0_i32 = arith.constant 0 : i32
    %c0_i32_0 = arith.constant 0 : i32
    %c0_i32_1 = arith.constant 0 : i32
    return %arg0, %arg1, %c0_i32, %c0_i32_0 : i32, i32, i32, i32
  }
  func.func @transform_1(%arg0: i32, %arg1: i32) -> i32 {
    %c0_i32 = arith.constant 0 : i32
    %c0_i32_0 = arith.constant 0 : i32
    return %c0_i32 : i32
  }
  func.func @transform_2(%arg0: i32, %arg1: i32) -> (i32, i32, i32, i32) {
    %c0_i32 = arith.constant 0 : i32
    %c0_i32_0 = arith.constant 0 : i32
    %c0_i32_1 = arith.constant 0 : i32
    return %arg0, %arg1, %c0_i32, %c0_i32_0 : i32, i32, i32, i32
  }
}

</mosaic_0001>

<bundles_post_ra>
// kernel: tpu_custom_call.1
= control target key start
LH: loop header
LB: loop body
LE: loop exit
PB: predicated region body
PF: predicated region fallthrough
CT: control target
= control target key end

     0   :  { %s1951_s0 = inlined_call_operand.hbm [shape: f32[2,4,16,16], index: 0, kind: input, shape index: {}]   ;;  %s1952_s1 = inlined_call_operand.hbm [shape: f32[196], index: 1, kind: input, shape index: {}]   ;;  %s1953_s2 = inlined_call_operand.hbm [shape: f32[2,4,16,16], index: 2, kind: output, shape index: {}]  }
   0x1   :  { %1965 = sst [smem:[#allocation15_spill]] %s1951_s0 }
   0x2   :  { %1966 = sst [smem:[#allocation16_spill]] %s1952_s1 }
   0x3   :  { %7 = vsyncpa [#allocation4], 0 }
   0x4   :  { %9 = vsyncpa [#allocation4 + $0x1], 0 }
   0x5   :  { %10 = vsyncpa [#allocation6], 0 }
   0x6   :  { %11 = vsyncpa [#allocation5], 0 }
   0x7   :  { %13 = vsyncpa [#allocation5 + $0x1], 0  ;;  %s1329_s9 = smov 0   ;;  %s1331_s10 = smov 0  }
   0x8   :  { %s1333_s11 = smov 0   ;;  %s1335_s12 = smov 0  }
   0x9   :  { %s1337_s13 = smov 0   ;;  %s1339_s14 = smov 0  }
   0xa LB: > { %1967 = sst [smem:[#allocation12_spill]] %s1289_s13  ;;  %s1053_s15 = sadd.s32 4294967295, %s1293_s14   ;;  %s1293_s14 = sphi %s1339_s14, %s19_s14   ;;  %s1289_s13 = sphi %s1337_s13, %s1987_s13   ;;  %s1285_s12 = sphi %s1335_s12, %s1986_s12   ;;  %s1281_s11 = sphi %s1333_s11, %s1990_s11   ;;  %s1277_s10 = sphi %s1331_s10, %s1989_s10   ;;  %s1273_s9 = sphi %s1329_s9, %s1988_s9  }
   0xb   : > { %s1054_s16 = sadd.s32 4294967294, %s1293_s14   ;;  %s40_s17 = sadd.s32 1, %s1281_s11 }
   0xc   : > { %p47_p0 = scmp.ne.s32.totalorder %s1281_s11, %s1277_s10  ;;  %p48_p1 = scmp.eq.s32.totalorder %s1293_s14, 0 }
   0xd   : > { %p53_p2 = scmp.ne.s32.totalorder %s1277_s10, %s1273_s9  ;;  %p1367_p3 = scmp.eq.s32.totalorder %s1053_s15, 0 }
   0xe   : > { %p100_p4 = scmp.eq.s32.totalorder %s1053_s15, 1  ;;  %p49_p5 = por %p48_p1, %p47_p0 }
   0xf   : > { %p106_p6 = scmp.eq.s32.totalorder %s1054_s16, 1  ;;  %p1373_p7 = por %p1367_p3, %p53_p2 }
  0x10   : > { %p1377_p8 = por %p100_p4, %p47_p0  ;;  %p1055_p10 = scmp.ge.s32.totalorder %s1293_s14, 1 }
  0x11   : > { %p1381_p9 = por %p106_p6, %p53_p2  ;;  %p113_p11 = scmp.lt.s32.totalorder %s1293_s14, 3 }
  0x12   : > { %p1094_p1 = scmp.lt.s32.totalorder %s1293_s14, 2  ;;  %s135_s23 = sand.u32 1, %s1281_s11  }
  0x13   : > { %s1971_s21 = scalar_select %p1381_p9, 1, 0 }
  0x14   : > { %p1388_p13 = pnand %p1055_p10, %p113_p11  ;;  %p1396_p2 = pnand %p1094_p1, %p49_p5 }
  0x15   : > { %s31_s25 = sadd.s32 1, %s1289_s13  ;;  %s1058_s26 = sshll.u32 %s135_s23, 6 }
  0x16   : > { %p1081_p0 = pneg %p1388_p13  ;;  %p33_p6 = scmp.ge.s32.totalorder %s31_s25, 2 }
  0x17   : > { %s1299_s27 = smov [#allocation7]   ;;  %s1974_s1 = sld [smem:[#allocation16_spill]] }
  0x18   : > { %p1082_p4 = pnand %p1081_p0, %p1367_p3  ;;  %s1992_s25 = smov (%p33_p6, %s31_s25), 0 }
  0x19   : > { %1975 = sst [smem:[#allocation13_spill]] %s1992_s25  ;;  %s1071_s30 = sshll.u32 %s1289_s13, 10 }
  0x1a   : > { %s35_s3 = ssub.s32 %s1289_s13, %s1992_s25  ;;  %s1976_s0 = sld [smem:[#allocation15_spill]] }
  0x1b   : > { %p38_p5 = scmp.eq.s32.totalorder %s35_s3, 0  ;;  %s139_s7 = scalar_lea.vmem [#allocation3], %s1058_s26 }
  0x1c   : > { %s149_s8 = sshll.u32 %s139_s7, 4  ;;  %s136_s16 = scalar_lea.sflag [#allocation4], %s135_s23  ;;  %s150_s8 = int_to_ptr.vmem [resolvable:$true] %s149_s8 }
  0x1d   : > { %1084 = dma.hbm_to_smem (!%p1082_p4), %s1974_s1, 32, %s1299_s27, [#allocation6]  }
  0x1e   : > { %s1417_s15 = scalar_select %p38_p5, %s1281_s11, %s40_s17  }
  0x1f   : > { %p1179_p10 = pneg %p1396_p2  ;;  %s1190_s27 = scalar_lea.vmem %s150_s8, 1024 }
  0x20   : > { %s148_s6 = scalar_lea.hbm %s1976_s0, %s1071_s30  ;;  %p1191_p11 = scmp.ne.s32.totalorder %s150_s8, %s1190_s27 }
  0x21   : > { %s1300_s28 = smov [#allocation3]  }
  0x22   : > { %p1193_p1 = pnand %p1191_p11, %p1179_p10  ;;  %s1195_s29 = sshll.u32 %s1300_s28, 4  ;;  %s1196_s29 = int_to_ptr.vmem [resolvable:$false] %s1195_s29 }
  0x23   : > { %s1197_s1 = scalar_lea.vmem %s1196_s29, 2048  ;;  %p1198_p4 = scmp.lt.s32.totalorder %s150_s8, %s1196_s29 }
  0x24   : > { %p1194_p0 = pneg %p1193_p1  ;;  %p1199_p6 = scmp.lt.s32.totalorder %s1197_s1, %s1190_s27 }
  0x26   : > { %p1200_p12 = por %p1199_p6, %p1198_p4 }
  0x28   : > { %p1201_p9 = pnand %p1200_p12, %p1194_p0 }
  0x2a   : > { %1204 = shalt.err (!%p1201_p9)
}
  0x2b   : > { %s1301_s26 = smov 128   ;;  %s1302_s17 = smov 8  }
  0x2c   : > { %1088 = dma.hbm_to_vmem [thread:$0]  (!%p1396_p2), %s148_s6, 1024, %s150_s8, %s136_s16, %s1301_s26, %s1301_s26, %s1302_s17  }
  0x2d   : > { %161 = sbr.rel (%p1388_p13) target bundleno = 497 (0x1f1), region = 28 }
  0x32   : > { %s1426_s23 = sand.u32 1, %s1277_s10  }
  0x33   : > { %s1062_s30 = sshll.u32 %s1426_s23, 6  ;;  %s164_s3 = scalar_lea.sflag [#allocation4], %s1426_s23 }
  0x34   : > { %s1430_s1 = scalar_lea.vmem [#allocation3], %s1062_s30 }
  0x35   : > { %1977 = sst [smem:[#allocation14_spill]] %s1430_s1 }
  0x36   : > { %1260 = dma.done.wait (%p1373_p7), %s164_s3, 1024  }
  0x37   : > { %1262 = vsyncadd (%p1373_p7), %s164_s3, 4294966272 }
  0x38   : > { %1264 = dma.done.wait (%p1367_p3), [#allocation6], 32  }
  0x39   : > { %1266 = vsyncadd (%p1367_p3), [#allocation6], 4294967264 }
  0x3a   : > { %176 = sfence }
  0x3b   : > { %vm195_vm0 = vcmask 174080   ;;  %vm198_vm1 = vcmask 23552   ;;  %vm201_vm2 = vcmask 21504   ;;  %v1303_v0 = vmov 0.0   ;;  %s1440_s19 = scalar_lea.vmem [#allocation8], %s1062_s30  ;;  %s1442_s22 = smov 0  }
  0x3c   : > { %196 = vst.msk [vmem:[#allocation2] sm:$0x7] %vm195_vm0, %v1303_v0  ;;  %197 = vst.msk [vmem:[#allocation2 + $0x13] sm:$0x7] %vm195_vm0, %v1303_v0  ;;  %vm203_vm3 = vcmask 179352   ;;  %vm206_vm4 = vcmask 177304  }
  0x3d   : > { %200 = vst.msk [vmem:[#allocation2 + $0x8] sm:$0xff] %vm198_vm1, %v1303_v0  ;;  %199 = vst.msk [vmem:[#allocation2] sm:$0xff] %vm198_vm1, %v1303_v0 }
  0x3e   : > { %202 = vst.msk [vmem:[#allocation2 + $0x10] sm:$0x3f] %vm201_vm2, %v1303_v0 }
  0x3f   : > { %205 = vst.msk [vmem:[#allocation2 + $0x8] sm:$0xff] %vm203_vm3, %v1303_v0  ;;  %204 = vst.msk [vmem:[#allocation2] sm:$0xff] %vm203_vm3, %v1303_v0 }
  0x40   : > { %207 = vst.msk [vmem:[#allocation2 + $0x10] sm:$0x3f] %vm206_vm4, %v1303_v0 }
  0x41 LB: >> { %s1978_s1 = sld [smem:[#allocation14_spill]]  ;;  %s1954_s18 = sshll.u32 %s1297_s22, 4  ;;  %vm226_vm5 = vcmask 154648   ;;  %vm925_vm6 = vcmask 130048   ;;  %s1297_s22 = sphi %s1442_s22, %s213_s22  }
  0x42   : >> { %s1304_s4 = smov 3   ;;  %s1452_s5 = smul.u32 49, %s1297_s22 }
  0x43   : >> { %s1957_s3 = smov 126  }
  0x44   : >> { %s255_s6 = sadd.s32 2, %s1452_s5  ;;  %s240_s7 = sadd.s32 1, %s1452_s5 }
  0x45   : >> { %s1456_s8 = sld [smem:[#allocation7 + %s255_s6]]  ;;  %s270_s27 = sadd.s32 3, %s1452_s5 }
  0x46   : >> { %s241_s16 = sld [smem:[#allocation7 + %s240_s7]]  ;;  %s285_s29 = sadd.s32 4, %s1452_s5 }
  0x47   : >> { %s215_s24 = scalar_lea.vmem %s1978_s1, %s1954_s18  ;;  %s1459_s28 = sld [smem:[#allocation7 + %s270_s27]] }
  0x48   : >> { %v216_v1 = vld [vmem:[%s215_s24] sm:$0xff]  ;;  %v217_v2 = vld [vmem:[%s215_s24 + $0x8] sm:$0xff]  ;;  %s1463_s26 = sld [smem:[#allocation7 + %s285_s29]]  ;;  %s300_s17 = sadd.s32 5, %s1452_s5 }
  0x49   : >> { %220 = vrot.lane.b32.xlu0 %v216_v1, %s1304_s4  ;;  %s1467_s30 = sld [smem:[#allocation7 + %s300_s17]]  ;;  %s1959_s24 = smov 127  }
  0x4a   : >> { %s1476_s6 = sld [smem:[#allocation7 + %s1452_s5]]  ;;  %s332_s7 = sadd.s32 7, %s1452_s5 }
  0x4b   : >> { %v257_v5 = vstv %s1456_s8  ;;  %s1955_s27 = smov 125   ;;  %s1486_s29 = sld [smem:[#allocation7 + %s332_s7]] }
  0x4c   : >> { %v242_v6 = vstv %s241_s16  ;;  %s339_s16 = sadd.s32 8, %s1452_s5  ;;  %s431_s17 = sadd.s32 14, %s1452_s5 }
  0x4d   : >> { %222 = vrot.lane.b32.xlu0 %v217_v2, %s1304_s4  ;;  %v272_v10 = vstv %s1459_s28  ;;  %s315_s4 = sadd.s32 6, %s1452_s5  ;;  %s354_s28 = sadd.s32 9, %s1452_s5 }
  0x4e   : >> { %v287_v14 = vstv %s1463_s26  ;;  %s1480_s8 = sld [smem:[#allocation7 + %s315_s4]]  ;;  %s530_s4 = sadd.s32 21, %s1452_s5 }
  0x4f   : >> { %s1490_s26 = sld [smem:[#allocation7 + %s339_s16]]  ;;  %v302_v17 = vstv %s1467_s30  ;;  %s728_s0 = sadd.s32 35, %s1452_s5 }
  0x50   : >> { %s1494_s18 = sld [smem:[#allocation7 + %s354_s28]]  ;;  %s827_s25 = sadd.s32 42, %s1452_s5  ;;  %v235_v20 = vstv %s1476_s6 }
  0x51   : >> { %s1499_s7 = sld [smem:[#allocation7 + %s431_s17]]  ;;  %s369_s16 = sadd.s32 10, %s1452_s5  ;;  %v334_v24 = vstv %s1486_s29 }
  0x52   : >> { %s1502_s1 = sld [smem:[#allocation7 + %s530_s4]]  ;;  %s1980_s17 = smov 125  }
  0x53   : >> { %s1511_s28 = sld [smem:[#allocation7 + %s728_s0]]  ;;  %s1310_s0 = smov 122  }
  0x54   : >> { %v317_v21 = vstv %s1480_s8  ;;  %s1515_s4 = sld [smem:[#allocation7 + %s827_s25]]  ;;  %s1981_s25 = smov 124  }
  0x55   : >> { %s1519_s13 = sld [smem:[#allocation7 + %s369_s16]]  ;;  %v341_v29 = vstv %s1490_s26  ;;  %s384_s6 = sadd.s32 11, %s1452_s5 }
  0x56   : >> { %v356_v36 = vstv %s1494_s18  ;;  %s1552_s8 = sld [smem:[#allocation7 + %s384_s6]]  ;;  %s1982_s18 = smov 127  }
  0x57   : >> { %v433_v33 = vstv %s1499_s7  ;;  %s438_s26 = sadd.s32 15, %s1452_s5  ;;  %s453_s16 = sadd.s32 16, %s1452_s5 }
  0x58   : >> { %v532_v43 = vstv %s1502_s1  ;;  %s1622_s7 = sld [smem:[#allocation7 + %s438_s26]]  ;;  %s483_s6 = sadd.s32 18, %s1452_s5 }
  0x59   : >> { %v730_v49 = vstv %s1511_s28  ;;  %s468_s28 = sadd.s32 17, %s1452_s5  ;;  %s537_s26 = sadd.s32 22, %s1452_s5 }
  0x5a   : >> { %v829_v50 = vstv %s1515_s4  ;;  %s1638_s4 = sld [smem:[#allocation7 + %s468_s28]]  ;;  %s567_s28 = sadd.s32 24, %s1452_s5 }
  0x5b   : >> { %v371_v53 = vstv %s1519_s13  ;;  %s414_s13 = sadd.s32 13, %s1452_s5 }
  0x5c   : >> { %v386_v1 = vstv %s1552_s8  ;;  %s1614_s29 = sld [smem:[#allocation7 + %s414_s13]]  ;;  %s513_s13 = sadd.s32 20, %s1452_s5 }
  0x5d   : >> { %s1646_s8 = sld [smem:[#allocation7 + %s483_s6]]  ;;  %s582_s6 = sadd.s32 25, %s1452_s5 }
  0xbb   : >> { %v221_v3 = vpop.permute.xlu0 %220 }
  0xbc   : >> { %227 = vst.msk [vmem:[#allocation2 + $0x3] sm:$0xff] %vm226_vm5, %v221_v3 }
  0xbf   : >> { %v223_v4 = vpop.permute.xlu0 %222 }
  0xc0   : >> { %228 = vst.msk [vmem:[#allocation2 + $0xb] sm:$0xff] %vm226_vm5, %v223_v4 }
  0xc3   : >> { %v232_v7 = vld [vmem:[#allocation2] sm:$0xff] }
  0xc4   : >> { %v258_v8 = vmul.f32 %v257_v5, %v232_v7  ;;  %v243_v9 = vmul.f32 %v242_v6, %v232_v7  ;;  %v273_v13 = vmul.f32 %v272_v10, %v232_v7  ;;  %v288_v15 = vmul.f32 %v287_v14, %v232_v7  ;;  %v1517_v22 = vld [vmem:[#allocation2 + $0x1] sm:$0xff] }
  0xc5   : >> { %v303_v18 = vmul.f32 %v302_v17, %v232_v7  ;;  %v1521_v23 = vmul.f32 %v235_v20, %v232_v7  ;;  %v318_v25 = vmul.f32 %v317_v21, %v232_v7  ;;  %v1535_v30 = vmul.f32 %v334_v24, %v1517_v22  ;;  %v1537_v31 = vld [vmem:[#allocation2 + $0x2] sm:$0xff] }
  0xc6   : >> { %262 = vrot.lane.b32.xlu0 %v258_v8, %s1957_s3  ;;  %247 = vrot.lane.b32.xlu1 %v243_v9, %s1959_s24  ;;  %s1962_s3 = smov 124   ;;  %v342_v34 = vmul.f32 %v341_v29, %v1517_v22  ;;  %v1548_v38 = vld [vmem:[#allocation2 + $0x3] sm:$0xff]  ;;  %v1572_v48 = vmul.f32 %v433_v33, %v1537_v31  ;;  %v357_v51 = vmul.f32 %v356_v36, %v1517_v22  ;;  %v416_v7 = vstv %s1614_s29  ;;  %s1662_s29 = sld [smem:[#allocation7 + %s513_s13]] }
  0xc7   : >> { %v1472_v11 = vld [vmem:[#allocation2 + $0x8] sm:$0xff]  ;;  %v1583_v55 = vmul.f32 %v532_v43, %v1548_v38  ;;  %v372_v63 = vmul.f32 %v371_v53, %v1517_v22  ;;  %v387_v2 = vmul.f32 %v386_v1, %v1517_v22  ;;  %v417_v8 = vmul.f32 %v416_v7, %v1517_v22  ;;  %s612_s13 = sadd.s32 27, %s1452_s5 }
  0xc8   : >> { %v244_v12 = vmul.f32 %v242_v6, %v1472_v11  ;;  %v259_v16 = vmul.f32 %v257_v5, %v1472_v11  ;;  %v274_v19 = vmul.f32 %v272_v10, %v1472_v11  ;;  %v289_v26 = vmul.f32 %v287_v14, %v1472_v11  ;;  %v1525_v27 = vld [vmem:[#allocation2 + $0x9] sm:$0xff] }
  0xc9   : >> { %v1528_v28 = vmul.f32 %v235_v20, %v1472_v11  ;;  %v1540_v32 = vmul.f32 %v334_v24, %v1525_v27  ;;  %v304_v35 = vmul.f32 %v302_v17, %v1472_v11  ;;  %v1546_v37 = vld [vmem:[#allocation2 + $0xa] sm:$0xff]  ;;  %v319_v52 = vmul.f32 %v317_v21, %v1472_v11 }
  0xca   : >> { %277 = vrot.lane.b32.xlu0 %v273_v13, %s1955_s27  ;;  %249 = vrot.lane.b32.xlu1 %v244_v12, %s1959_s24  ;;  %s629_s27 = sadd.s32 28, %s1452_s5  ;;  %s1979_s24 = smov 126   ;;  %v1550_v39 = vld [vmem:[#allocation2 + $0xb] sm:$0xff]  ;;  %v1580_v54 = vmul.f32 %v433_v33, %v1546_v37  ;;  %v343_v0 = vmul.f32 %v341_v29, %v1525_v27  ;;  %v358_v3 = vmul.f32 %v356_v36, %v1525_v27  ;;  %v440_v10 = vstv %s1622_s7 }
  0xcb   : >> { %s1508_s30 = sld [smem:[#allocation7 + %s629_s27]]  ;;  %v1554_v40 = vld [vmem:[#allocation2 + $0x4] sm:$0xff]  ;;  %v1556_v41 = vld [vmem:[#allocation2 + $0xc] sm:$0xff]  ;;  %s399_s27 = sadd.s32 12, %s1452_s5  ;;  %v1586_v56 = vmul.f32 %v532_v43, %v1550_v39  ;;  %v373_v6 = vmul.f32 %v371_v53, %v1525_v27  ;;  %v388_v9 = vmul.f32 %v386_v1, %v1525_v27  ;;  %v441_v11 = vmul.f32 %v440_v10, %v1537_v31 }
  0xcc   : >> { %v1558_v42 = vld [vmem:[#allocation2 + $0x5] sm:$0xff]  ;;  %v1565_v45 = vld [vmem:[#allocation2 + $0xd] sm:$0xff]  ;;  %s1594_s1 = sld [smem:[#allocation7 + %s399_s27]]  ;;  %s498_s27 = sadd.s32 19, %s1452_s5 }
  0xcd   : >> { %v1567_v46 = vld [vmem:[#allocation2 + $0x6] sm:$0xff]  ;;  %v1569_v47 = vld [vmem:[#allocation2 + $0xe] sm:$0xff]  ;;  %v1597_v59 = vmul.f32 %v730_v49, %v1558_v42  ;;  %v1600_v60 = vmul.f32 %v730_v49, %v1565_v45  ;;  %s1670_s7 = sld [smem:[#allocation7 + %s537_s26]]  ;;  %s636_s26 = sadd.s32 29, %s1452_s5 }
  0xce   : >> { %292 = vrot.lane.b32.xlu0 %v288_v15, %s1962_s3  ;;  %264 = vrot.lane.b32.xlu1 %v259_v16, %s1979_s24  ;;  %s1309_s3 = smov 123   ;;  %v1603_v61 = vmul.f32 %v829_v50, %v1567_v46  ;;  %v1606_v62 = vmul.f32 %v829_v50, %v1569_v47  ;;  %v418_v15 = vmul.f32 %v416_v7, %v1525_v27  ;;  %v470_v16 = vstv %s1638_s4  ;;  %s1686_s4 = sld [smem:[#allocation7 + %s567_s28]] }
  0xcf   : >> { %v471_v17 = vmul.f32 %v470_v16, %v1537_v31  ;;  %s666_s28 = sadd.s32 31, %s1452_s5 }
  0xd1   : >> { %v631_v44 = vstv %s1508_s30  ;;  %s1630_s30 = sld [smem:[#allocation7 + %s453_s16]]  ;;  %s552_s16 = sadd.s32 23, %s1452_s5 }
  0xd2   : >> { %307 = vrot.lane.b32.xlu0 %v303_v18, %s1309_s3  ;;  %279 = vrot.lane.b32.xlu1 %v274_v19, %s1980_s17  ;;  %v1589_v57 = vmul.f32 %v631_v44, %v1554_v40  ;;  %v1592_v58 = vmul.f32 %v631_v44, %v1556_v41  ;;  %v401_v4 = vstv %s1594_s1  ;;  %s1654_s1 = sld [smem:[#allocation7 + %s498_s27]]  ;;  %v442_v18 = vmul.f32 %v440_v10, %v1546_v37  ;;  %s597_s27 = sadd.s32 26, %s1452_s5 }
  0xd3   : >> { %v402_v5 = vmul.f32 %v401_v4, %v1517_v22  ;;  %v403_v12 = vmul.f32 %v401_v4, %v1525_v27  ;;  %v485_v19 = vstv %s1646_s8  ;;  %v539_v33 = vstv %s1670_s7  ;;  %s1694_s8 = sld [smem:[#allocation7 + %s582_s6]]  ;;  %s681_s6 = sadd.s32 32, %s1452_s5 }
  0xd4   : >> { %v486_v20 = vmul.f32 %v485_v19, %v1537_v31  ;;  %v487_v29 = vmul.f32 %v485_v19, %v1546_v37  ;;  %v569_v44 = vstv %s1686_s4  ;;  %v541_v50 = vmul.f32 %v539_v33, %v1550_v39  ;;  %s1718_s7 = sld [smem:[#allocation7 + %s636_s26]]  ;;  %s735_s26 = sadd.s32 36, %s1452_s5 }
  0xd5   : >> { %v570_v49 = vmul.f32 %v569_v44, %v1548_v38  ;;  %s1734_s4 = sld [smem:[#allocation7 + %s666_s28]]  ;;  %s765_s28 = sadd.s32 38, %s1452_s5 }
  0xd6   : >> { %322 = vrot.lane.b32.xlu0 %v318_v25, %s1310_s0  ;;  %294 = vrot.lane.b32.xlu1 %v289_v26, %s1981_s25  ;;  %v472_v25 = vmul.f32 %v470_v16, %v1546_v37  ;;  %v515_v26 = vstv %s1662_s29  ;;  %s1710_s29 = sld [smem:[#allocation7 + %s612_s13]]  ;;  %s711_s13 = sadd.s32 34, %s1452_s5 }
  0xd7   : >> { %v455_v13 = vstv %s1630_s30  ;;  %s1678_s30 = sld [smem:[#allocation7 + %s552_s16]]  ;;  %v516_v27 = vmul.f32 %v515_v26, %v1537_v31  ;;  %v517_v43 = vmul.f32 %v515_v26, %v1546_v37  ;;  %s651_s16 = sadd.s32 30, %s1452_s5 }
  0xd8   : >> { %v456_v14 = vmul.f32 %v455_v13, %v1537_v31  ;;  %v457_v21 = vmul.f32 %v455_v13, %v1546_v37  ;;  %v500_v22 = vstv %s1654_s1  ;;  %s1702_s1 = sld [smem:[#allocation7 + %s597_s27]]  ;;  %s696_s27 = sadd.s32 33, %s1452_s5 }
  0xd9   : >> { %v501_v24 = vmul.f32 %v500_v22, %v1537_v31 }
  0xda   : >> { %346 = vrot.lane.b32.xlu0 %v342_v34, %s1982_s18  ;;  %309 = vrot.lane.b32.xlu1 %v304_v35, %s1309_s3  ;;  %v540_v34 = vmul.f32 %v539_v33, %v1548_v38  ;;  %v502_v35 = vmul.f32 %v500_v22, %v1546_v37  ;;  %v638_v4 = vstv %s1718_s7  ;;  %s1766_s7 = sld [smem:[#allocation7 + %s735_s26]]  ;;  %s834_s26 = sadd.s32 43, %s1452_s5 }
  0xdc   : >> { %v614_v1 = vstv %s1710_s29  ;;  %s1758_s29 = sld [smem:[#allocation7 + %s711_s13]]  ;;  %s810_s13 = sadd.s32 41, %s1452_s5 }
  0xdd   : >> { %v554_v36 = vstv %s1678_s30  ;;  %s1726_s30 = sld [smem:[#allocation7 + %s651_s16]]  ;;  %s750_s16 = sadd.s32 37, %s1452_s5 }
  0xde   : >> { %361 = vrot.lane.b32.xlu0 %v357_v51, %s1979_s24  ;;  %324 = vrot.lane.b32.xlu1 %v319_v52, %s1310_s0  ;;  %v555_v31 = vmul.f32 %v554_v36, %v1548_v38  ;;  %v584_v51 = vstv %s1694_s8  ;;  %v556_v52 = vmul.f32 %v554_v36, %v1550_v39  ;;  %v599_v53 = vstv %s1702_s1  ;;  %s1742_s8 = sld [smem:[#allocation7 + %s681_s6]]  ;;  %s780_s6 = sadd.s32 39, %s1452_s5 }
  0xdf   : >> { %v585_v37 = vmul.f32 %v584_v51, %v1548_v38  ;;  %s1750_s1 = sld [smem:[#allocation7 + %s696_s27]]  ;;  %s795_s27 = sadd.s32 40, %s1452_s5 }
  0xe2   : >> { %376 = vrot.lane.b32.xlu0 %v372_v63, %s1980_s17  ;;  %348 = vrot.lane.b32.xlu1 %v343_v0, %s1982_s18  ;;  %v600_v63 = vmul.f32 %v599_v53, %v1548_v38  ;;  %v571_v0 = vmul.f32 %v569_v44, %v1550_v39 }
  0xe3   : >> { %v653_v7 = vstv %s1726_s30  ;;  %s1774_s30 = sld [smem:[#allocation7 + %s750_s16]]  ;;  %s849_s16 = sadd.s32 44, %s1452_s5 }
  0xe4   : >> { %v655_v13 = vmul.f32 %v653_v7, %v1556_v41 }
  0xe6   : >> { %391 = vrot.lane.b32.xlu0 %v387_v2, %s1981_s25  ;;  %363 = vrot.lane.b32.xlu1 %v358_v3, %s1979_s24  ;;  %v615_v2 = vmul.f32 %v614_v1, %v1548_v38  ;;  %v586_v3 = vmul.f32 %v584_v51, %v1550_v39  ;;  %v654_v38 = vmul.f32 %v653_v7, %v1554_v40 }
  0xe9   : >> { %v752_v26 = vstv %s1774_s30  ;;  %s1824_s30 = sld [smem:[#allocation7 + %s849_s16]] }
  0xea   : >> { %406 = vrot.lane.b32.xlu0 %v402_v5, %s1309_s3  ;;  %378 = vrot.lane.b32.xlu1 %v373_v6, %s1980_s17  ;;  %v639_v5 = vmul.f32 %v638_v4, %v1554_v40  ;;  %v601_v6 = vmul.f32 %v599_v53, %v1550_v39 }
  0xee   : >> { %421 = vrot.lane.b32.xlu0 %v417_v8, %s1310_s0  ;;  %393 = vrot.lane.b32.xlu1 %v388_v9, %s1981_s25  ;;  %v616_v8 = vmul.f32 %v614_v1, %v1550_v39  ;;  %v668_v9 = vstv %s1734_s4  ;;  %s1782_s4 = sld [smem:[#allocation7 + %s765_s28]]  ;;  %s864_s28 = sadd.s32 45, %s1452_s5 }
  0xef   : >> { %v669_v10 = vmul.f32 %v668_v9, %v1554_v40  ;;  %v670_v16 = vmul.f32 %v668_v9, %v1556_v41 }
  0xf2   : >> { %445 = vrot.lane.b32.xlu0 %v441_v11, %s1982_s18  ;;  %408 = vrot.lane.b32.xlu1 %v403_v12, %s1309_s3  ;;  %v640_v11 = vmul.f32 %v638_v4, %v1556_v41  ;;  %v683_v12 = vstv %s1742_s8  ;;  %s1791_s8 = sld [smem:[#allocation7 + %s780_s6]]  ;;  %s879_s6 = sadd.s32 46, %s1452_s5 }
  0xf3   : >> { %v684_v39 = vmul.f32 %v683_v12, %v1554_v40  ;;  %v685_v19 = vmul.f32 %v683_v12, %v1556_v41 }
  0xf6   : >> { %460 = vrot.lane.b32.xlu0 %v456_v14, %s1979_s24  ;;  %423 = vrot.lane.b32.xlu1 %v418_v15, %s1310_s0  ;;  %v698_v14 = vstv %s1750_s1  ;;  %s1800_s1 = sld [smem:[#allocation7 + %s795_s27]]  ;;  %s894_s27 = sadd.s32 47, %s1452_s5 }
  0xf7   : >> { %v699_v15 = vmul.f32 %v698_v14, %v1554_v40 }
  0xf8   : >> { %v782_v51 = vstv %s1791_s8  ;;  %s1841_s8 = sld [smem:[#allocation7 + %s879_s6]] }
  0xf9   : >> { %v783_v53 = vmul.f32 %v782_v51, %v1558_v42 }
  0xfa   : >> { %475 = vrot.lane.b32.xlu0 %v471_v17, %s1980_s17  ;;  %447 = vrot.lane.b32.xlu1 %v442_v18, %s1982_s18  ;;  %v713_v17 = vstv %s1758_s29  ;;  %s1808_s29 = sld [smem:[#allocation7 + %s810_s13]]  ;;  %s909_s13 = sadd.s32 48, %s1452_s5 }
  0xfb   : >> { %v714_v18 = vmul.f32 %v713_v17, %v1554_v40  ;;  %s1983_s5 = sshll.u32 %s1297_s22, 4  ;;  %s213_s22 = sadd.s32 1, %s1297_s22  }
  0xfc   : >> { %v797_v1 = vstv %s1800_s1  ;;  %s1850_s1 = sld [smem:[#allocation7 + %s894_s27]]  ;;  %p210_p3 = scmp.ge.s32.totalorder %s213_s22, 4  }
  0xfd   : > { %s1311_s22 = smov (%p210_p3), [#allocation8]  }
  0xfe   : >> { %490 = vrot.lane.b32.xlu0 %v486_v20, %s1981_s25  ;;  %462 = vrot.lane.b32.xlu1 %v457_v21, %s1979_s24  ;;  %v737_v20 = vstv %s1766_s7  ;;  %s1816_s7 = sld [smem:[#allocation7 + %s834_s26]]  ;;  %s929_s26 = scalar_lea.sflag (%p210_p3), [#allocation5], %s1426_s23 }
  0xff   : > { %s1209_s16 = sshll.u32 (%p210_p3), %s1311_s22, 4  ;;  %s1210_s16 = int_to_ptr.vmem [resolvable:$false] %s1209_s16 }
 0x102   : >> { %505 = vrot.lane.b32.xlu0 %v501_v24, %s1309_s3  ;;  %477 = vrot.lane.b32.xlu1 %v472_v25, %s1980_s17  ;;  %v738_v24 = vmul.f32 %v737_v20, %v1558_v42  ;;  %v700_v25 = vmul.f32 %v698_v14, %v1556_v41 }
 0x106   : >> { %520 = vrot.lane.b32.xlu0 %v516_v27, %s1310_s0  ;;  %492 = vrot.lane.b32.xlu1 %v487_v29, %s1981_s25 }
 0x10a   : >> { %544 = vrot.lane.b32.xlu0 %v540_v34, %s1982_s18  ;;  %507 = vrot.lane.b32.xlu1 %v502_v35, %s1309_s3  ;;  %v753_v34 = vmul.f32 %v752_v26, %v1558_v42  ;;  %v715_v35 = vmul.f32 %v713_v17, %v1556_v41  ;;  %v799_v17 = vmul.f32 %v797_v1, %v1565_v45 }
 0x10e   : >> { %559 = vrot.lane.b32.xlu0 %v555_v31, %s1979_s24  ;;  %522 = vrot.lane.b32.xlu1 %v517_v43, %s1310_s0  ;;  %v767_v31 = vstv %s1782_s4  ;;  %s1833_s4 = sld [smem:[#allocation7 + %s864_s28]] }
 0x112   : >> { %574 = vrot.lane.b32.xlu0 %v570_v49, %s1980_s17  ;;  %546 = vrot.lane.b32.xlu1 %v541_v50, %s1982_s18  ;;  %v768_v49 = vmul.f32 %v767_v31, %v1558_v42  ;;  %v739_v50 = vmul.f32 %v737_v20, %v1565_v45 }
 0x116   : >> { %589 = vrot.lane.b32.xlu0 %v585_v37, %s1981_s25  ;;  %561 = vrot.lane.b32.xlu1 %v556_v52, %s1979_s24 }
 0x11a   : >> { %604 = vrot.lane.b32.xlu0 %v600_v63, %s1309_s3  ;;  %576 = vrot.lane.b32.xlu1 %v571_v0, %s1980_s17  ;;  %v754_v63 = vmul.f32 %v752_v26, %v1565_v45 }
 0x11e   : >> { %619 = vrot.lane.b32.xlu0 %v615_v2, %s1310_s0  ;;  %591 = vrot.lane.b32.xlu1 %v586_v3, %s1981_s25 }
 0x122   : >> { %643 = vrot.lane.b32.xlu0 %v639_v5, %s1982_s18  ;;  %606 = vrot.lane.b32.xlu1 %v601_v6, %s1309_s3  ;;  %v798_v5 = vmul.f32 %v797_v1, %v1558_v42  ;;  %v769_v6 = vmul.f32 %v767_v31, %v1565_v45 }
 0x126   : >> { %658 = vrot.lane.b32.xlu0 %v654_v38, %s1979_s24  ;;  %621 = vrot.lane.b32.xlu1 %v616_v8, %s1310_s0  ;;  %v812_v8 = vstv %s1808_s29  ;;  %s1858_s29 = sld [smem:[#allocation7 + %s909_s13]] }
 0x127   : >> { %v813_v12 = vmul.f32 %v812_v8, %v1558_v42 }
 0x12a   : >> { %673 = vrot.lane.b32.xlu0 %v669_v10, %s1980_s17  ;;  %645 = vrot.lane.b32.xlu1 %v640_v11, %s1982_s18 }
 0x12e   : >> { %688 = vrot.lane.b32.xlu0 %v684_v39, %s1981_s25  ;;  %660 = vrot.lane.b32.xlu1 %v655_v13, %s1979_s24  ;;  %v784_v39 = vmul.f32 %v782_v51, %v1565_v45  ;;  %v836_v13 = vstv %s1816_s7 }
 0x132   : >> { %703 = vrot.lane.b32.xlu0 %v699_v15, %s1309_s3  ;;  %675 = vrot.lane.b32.xlu1 %v670_v16, %s1980_s17  ;;  %v837_v16 = vmul.f32 %v836_v13, %v1567_v46 }
 0x136   : >> { %718 = vrot.lane.b32.xlu0 %v714_v18, %s1310_s0  ;;  %690 = vrot.lane.b32.xlu1 %v685_v19, %s1981_s25  ;;  %v851_v18 = vstv %s1824_s30 }
 0x137   : >> { %v853_v31 = vmul.f32 %v851_v18, %v1569_v47 }
 0x138   : >> { %v248_v21 = vpop.permute.xlu1 %247  ;;  %v263_v22 = vpop.permute.xlu0 %262 }
 0x139   : >> { %v253_v40 = vadd.f32 %v248_v21, %v1521_v23 }
 0x13a   : >> { %742 = vrot.lane.b32.xlu0 %v738_v24, %s1982_s18  ;;  %705 = vrot.lane.b32.xlu1 %v700_v25, %s1309_s3  ;;  %v814_v24 = vmul.f32 %v812_v8, %v1565_v45  ;;  %v866_v25 = vstv %s1833_s4 }
 0x13b   : >> { %v268_v27 = vadd.f32 %v263_v22, %v253_v40  ;;  %v852_v22 = vmul.f32 %v851_v18, %v1567_v46 }
 0x13c   : >> { %v250_v29 = vpop.permute.xlu1 %249  ;;  %v278_v33 = vpop.permute.xlu0 %277 }
 0x13d   : >> { %v254_v36 = vadd.f32 %v250_v29, %v1528_v28  ;;  %v283_v23 = vadd.f32 %v278_v33, %v268_v27  ;;  %v838_v29 = vmul.f32 %v836_v13, %v1569_v47 }
 0x13e   : >> { %757 = vrot.lane.b32.xlu0 %v753_v34, %s1979_s24  ;;  %720 = vrot.lane.b32.xlu1 %v715_v35, %s1310_s0  ;;  %v881_v34 = vstv %s1841_s8 }
 0x140   : >> { %v265_v43 = vpop.permute.xlu1 %264  ;;  %v293_v44 = vpop.permute.xlu0 %292 }
 0x141   : >> { %v269_v41 = vadd.f32 %v265_v43, %v254_v36  ;;  %v298_v28 = vadd.f32 %v293_v44, %v283_v23  ;;  %v882_v23 = vmul.f32 %v881_v34, %v1567_v46  ;;  %v896_v44 = vstv %s1850_s1 }
 0x142   : >> { %772 = vrot.lane.b32.xlu0 %v768_v49, %s1980_s17  ;;  %744 = vrot.lane.b32.xlu1 %v739_v50, %s1982_s18  ;;  %v897_v51 = vmul.f32 %v896_v44, %v1567_v46 }
 0x144   : >> { %v280_v37 = vpop.permute.xlu1 %279  ;;  %v308_v52 = vpop.permute.xlu0 %307 }
 0x145   : >> { %v284_v0 = vadd.f32 %v280_v37, %v269_v41  ;;  %v313_v2 = vadd.f32 %v308_v52, %v298_v28  ;;  %v868_v37 = vmul.f32 %v866_v25, %v1569_v47 }
 0x146   : >> { %787 = vrot.lane.b32.xlu0 %v783_v53, %s1981_s25  ;;  %759 = vrot.lane.b32.xlu1 %v754_v63, %s1979_s24  ;;  %v911_v63 = vstv %s1858_s29 }
 0x148   : >> { %v295_v3 = vpop.permute.xlu1 %294  ;;  %v323_v4 = vpop.permute.xlu0 %322 }
 0x149   : >> { %v299_v7 = vadd.f32 %v295_v3, %v284_v0  ;;  %v328_v38 = vadd.f32 %v323_v4, %v313_v2  ;;  %v912_v4 = vmul.f32 %v911_v63, %v1567_v46 }
 0x14a   : >> { %802 = vrot.lane.b32.xlu0 %v798_v5, %s1309_s3  ;;  %774 = vrot.lane.b32.xlu1 %v769_v6, %s1980_s17  ;;  %v883_v5 = vmul.f32 %v881_v34, %v1569_v47 }
 0x14b   : >> { %v337_v9 = vadd.f32 %v1535_v30, %v328_v38 }
 0x14c   : >> { %v310_v10 = vpop.permute.xlu1 %309  ;;  %v347_v11 = vpop.permute.xlu0 %346 }
 0x14d   : >> { %v314_v14 = vadd.f32 %v310_v10, %v299_v7  ;;  %v352_v40 = vadd.f32 %v347_v11, %v337_v9  ;;  %v898_v9 = vmul.f32 %v896_v44, %v1569_v47 }
 0x14e   : >> { %817 = vrot.lane.b32.xlu0 %v813_v12, %s1310_s0  ;;  %789 = vrot.lane.b32.xlu1 %v784_v39, %s1981_s25 }
 0x150   : >> { %v325_v15 = vpop.permute.xlu1 %324  ;;  %v362_v30 = vpop.permute.xlu0 %361 }
 0x151   : >> { %v329_v42 = vadd.f32 %v325_v15, %v314_v14  ;;  %v367_v33 = vadd.f32 %v362_v30, %v352_v40 }
 0x152   : >> { %841 = vrot.lane.b32.xlu0 %v837_v16, %s1982_s18  ;;  %804 = vrot.lane.b32.xlu1 %v799_v17, %s1309_s3 }
 0x153   : >> { %v338_v19 = vadd.f32 %v1540_v32, %v329_v42  ;;  %v867_v32 = vmul.f32 %v866_v25, %v1567_v46  ;;  %v913_v46 = vmul.f32 %v911_v63, %v1569_v47 }
 0x154   : >> { %v349_v20 = vpop.permute.xlu1 %348  ;;  %v377_v21 = vpop.permute.xlu0 %376 }
 0x155   : >> { %v382_v45 = vadd.f32 %v377_v21, %v367_v33  ;;  %v353_v49 = vadd.f32 %v349_v20, %v338_v19 }
 0x156   : >> { %856 = vrot.lane.b32.xlu0 %v852_v22, %s1979_s24  ;;  %819 = vrot.lane.b32.xlu1 %v814_v24, %s1310_s0 }
 0x158   : >> { %v364_v26 = vpop.permute.xlu1 %363  ;;  %v392_v27 = vpop.permute.xlu0 %391 }
 0x159   : >> { %v397_v43 = vadd.f32 %v392_v27, %v382_v45  ;;  %v368_v52 = vadd.f32 %v364_v26, %v353_v49 }
 0x15a   : >> { %871 = vrot.lane.b32.xlu0 %v867_v32, %s1980_s17  ;;  %843 = vrot.lane.b32.xlu1 %v838_v29, %s1982_s18  ;;  %s945_s18 = sshll.u32 (%p210_p3), %s1440_s19, 4  ;;  %s1903_s18 = int_to_ptr.vmem [resolvable:$true] %s945_s18 }
 0x15b   : > { %s1205_s7 = scalar_lea.vmem (%p210_p3), %s1903_s18, 1024  ;;  %p1212_p13 = scmp.lt.s32.totalorder (%p210_p3), %s1903_s18, %s1210_s16 }
 0x15c   : >> { %v379_v35 = vpop.permute.xlu1 %378  ;;  %v407_v36 = vpop.permute.xlu0 %406  ;;  %p1206_p7 = scmp.ne.s32.totalorder (%p210_p3), %s1903_s18, %s1205_s7 }
 0x15d   : >> { %v412_v50 = vadd.f32 %v407_v36, %v397_v43  ;;  %v383_v0 = vadd.f32 %v379_v35, %v368_v52 }
 0x15e   : >> { %886 = vrot.lane.b32.xlu0 %v882_v23, %s1981_s25  ;;  %858 = vrot.lane.b32.xlu1 %v853_v31, %s1979_s24  ;;  %s1072_s24 = sshll.u32 (%p210_p3), %s1285_s12, 10  ;;  %p1207_p9 = pnand (%p210_p3), %p1206_p7, %p1377_p8 }
 0x15f   : > { %s1211_s12 = scalar_lea.vmem (%p210_p3), %s1210_s16, 2048 }
 0x160   : >> { %v394_v41 = vpop.permute.xlu1 %393  ;;  %v422_v28 = vpop.permute.xlu0 %421  ;;  %p1208_p12 = pneg (%p210_p3), %p1207_p9  ;;  %p1213_p2 = scmp.lt.s32.totalorder (%p210_p3), %s1211_s12, %s1205_s7 }
 0x161   : >> { %v427_v53 = vadd.f32 %v422_v28, %v412_v50  ;;  %v398_v6 = vadd.f32 %v394_v41, %v383_v0 }
 0x162   : >> { %901 = vrot.lane.b32.xlu0 %v897_v51, %s1309_s3  ;;  %873 = vrot.lane.b32.xlu1 %v868_v37, %s1980_s17  ;;  %p1214_p5 = por (%p210_p3), %p1213_p2, %p1212_p13 }
 0x163   : >> { %v436_v1 = vadd.f32 %v1572_v48, %v427_v53 }
 0x164   : >> { %v409_v2 = vpop.permute.xlu1 %408  ;;  %v446_v3 = vpop.permute.xlu0 %445  ;;  %p1215_p10 = pnand (%p210_p3), %p1214_p5, %p1208_p12 }
 0x165   : >> { %v413_v7 = vadd.f32 %v409_v2, %v398_v6  ;;  %v451_v39 = vadd.f32 %v446_v3, %v436_v1 }
 0x166   : >> { %916 = vrot.lane.b32.xlu0 %v912_v4, %s1310_s0  ;;  %888 = vrot.lane.b32.xlu1 %v883_v5, %s1981_s25  ;;  %s1900_s25 = scalar_lea.hbm (%p210_p3), %s1953_s2, %s1072_s24 }
 0x168   : >> { %v424_v38 = vpop.permute.xlu1 %423  ;;  %v461_v8 = vpop.permute.xlu0 %460 }
 0x169   : >> { %v428_v10 = vadd.f32 %v424_v38, %v413_v7  ;;  %v466_v15 = vadd.f32 %v461_v8, %v451_v39 }
 0x16a   : >> { %903 = vrot.lane.b32.xlu1 %v898_v9, %s1309_s3  ;;  %s924_s3 = scalar_lea.vmem %s1440_s19, %s1983_s5 [#allocation8] }
 0x16b   : >> { %v437_v48 = vadd.f32 %v1580_v54, %v428_v10 }
 0x16c   : >> { %v448_v11 = vpop.permute.xlu1 %447  ;;  %v476_v12 = vpop.permute.xlu0 %475 }
 0x16d   : >> { %v481_v30 = vadd.f32 %v476_v12, %v466_v15  ;;  %v452_v18 = vadd.f32 %v448_v11, %v437_v48 }
 0x16e   : >> { %918 = vrot.lane.b32.xlu1 %v913_v46, %s1310_s0 }
 0x170   : >> { %v463_v13 = vpop.permute.xlu1 %462  ;;  %v491_v14 = vpop.permute.xlu0 %490 }
 0x171   : >> { %v496_v42 = vadd.f32 %v491_v14, %v481_v30  ;;  %v467_v22 = vadd.f32 %v463_v13, %v452_v18 }
 0x174   : >> { %v478_v16 = vpop.permute.xlu1 %477  ;;  %v506_v17 = vpop.permute.xlu0 %505 }
 0x175   : >> { %v511_v19 = vadd.f32 %v506_v17, %v496_v42  ;;  %v482_v24 = vadd.f32 %v478_v16, %v467_v22 }
 0x178   : >> { %v493_v20 = vpop.permute.xlu1 %492  ;;  %v521_v21 = vpop.permute.xlu0 %520 }
 0x179   : >> { %v526_v54 = vadd.f32 %v521_v21, %v511_v19  ;;  %v497_v26 = vadd.f32 %v493_v20, %v482_v24 }
 0x17b   : >> { %v535_v25 = vadd.f32 %v1583_v55, %v526_v54 }
 0x17c   : >> { %v508_v47 = vpop.permute.xlu1 %507  ;;  %v545_v40 = vpop.permute.xlu0 %544 }
 0x17d   : >> { %v512_v27 = vadd.f32 %v508_v47, %v497_v26  ;;  %v550_v36 = vadd.f32 %v545_v40, %v535_v25 }
 0x180   : >> { %v523_v32 = vpop.permute.xlu1 %522  ;;  %v560_v29 = vpop.permute.xlu0 %559 }
 0x181   : >> { %v527_v33 = vadd.f32 %v523_v32, %v512_v27  ;;  %v565_v43 = vadd.f32 %v560_v29, %v550_v36 }
 0x183   : >> { %v536_v34 = vadd.f32 %v1586_v56, %v527_v33 }
 0x184   : >> { %v547_v45 = vpop.permute.xlu1 %546  ;;  %v575_v35 = vpop.permute.xlu0 %574 }
 0x185   : >> { %v580_v44 = vadd.f32 %v575_v35, %v565_v43  ;;  %v551_v55 = vadd.f32 %v547_v45, %v536_v34 }
 0x188   : >> { %v562_v23 = vpop.permute.xlu1 %561  ;;  %v590_v31 = vpop.permute.xlu0 %589 }
 0x189   : >> { %v595_v41 = vadd.f32 %v590_v31, %v580_v44  ;;  %v566_v52 = vadd.f32 %v562_v23, %v551_v55 }
 0x18c   : >> { %v577_v49 = vpop.permute.xlu1 %576  ;;  %v605_v50 = vpop.permute.xlu0 %604 }
 0x18d   : >> { %v610_v28 = vadd.f32 %v605_v50, %v595_v41  ;;  %v581_v63 = vadd.f32 %v577_v49, %v566_v52 }
 0x190   : >> { %v592_v51 = vpop.permute.xlu1 %591  ;;  %v620_v37 = vpop.permute.xlu0 %619 }
 0x191   : >> { %v625_v53 = vadd.f32 %v620_v37, %v610_v28  ;;  %v596_v2 = vadd.f32 %v592_v51, %v581_v63 }
 0x193   : >> { %v634_v0 = vadd.f32 %v1589_v57, %v625_v53 }
 0x194   : >> { %v607_v56 = vpop.permute.xlu1 %606  ;;  %v644_v1 = vpop.permute.xlu0 %643 }
 0x195   : >> { %v611_v3 = vadd.f32 %v607_v56, %v596_v2  ;;  %v649_v9 = vadd.f32 %v644_v1, %v634_v0 }
 0x198   : >> { %v622_v4 = vpop.permute.xlu1 %621  ;;  %v659_v5 = vpop.permute.xlu0 %658 }
 0x199   : >> { %v626_v6 = vadd.f32 %v622_v4, %v611_v3  ;;  %v664_v11 = vadd.f32 %v659_v5, %v649_v9 }
 0x19b   : >> { %v635_v7 = vadd.f32 %v1592_v58, %v626_v6 }
 0x19c   : >> { %v646_v38 = vpop.permute.xlu1 %645  ;;  %v674_v8 = vpop.permute.xlu0 %673 }
 0x19d   : >> { %v679_v12 = vadd.f32 %v674_v8, %v664_v11  ;;  %v650_v57 = vadd.f32 %v646_v38, %v635_v7 }
 0x1a0   : >> { %v661_v10 = vpop.permute.xlu1 %660  ;;  %v689_v48 = vpop.permute.xlu0 %688 }
 0x1a1   : >> { %v694_v13 = vadd.f32 %v689_v48, %v679_v12  ;;  %v665_v16 = vadd.f32 %v661_v10, %v650_v57 }
 0x1a4   : >> { %v676_v46 = vpop.permute.xlu1 %675  ;;  %v704_v39 = vpop.permute.xlu0 %703 }
 0x1a5   : >> { %v709_v14 = vadd.f32 %v704_v39, %v694_v13  ;;  %v680_v42 = vadd.f32 %v676_v46, %v665_v16 }
 0x1a8   : >> { %v691_v15 = vpop.permute.xlu1 %690  ;;  %v719_v30 = vpop.permute.xlu0 %718 }
 0x1a9   : >> { %v724_v17 = vadd.f32 %v719_v30, %v709_v14  ;;  %v695_v20 = vadd.f32 %v691_v15, %v680_v42 }
 0x1ab   : >> { %v733_v18 = vadd.f32 %v1597_v59, %v724_v17 }
 0x1ac   : >> { %v706_v58 = vpop.permute.xlu1 %705  ;;  %v743_v19 = vpop.permute.xlu0 %742 }
 0x1ad   : >> { %v710_v21 = vadd.f32 %v706_v58, %v695_v20  ;;  %v748_v26 = vadd.f32 %v743_v19, %v733_v18 }
 0x1b0   : >> { %v721_v22 = vpop.permute.xlu1 %720  ;;  %v758_v54 = vpop.permute.xlu0 %757 }
 0x1b1   : >> { %v725_v24 = vadd.f32 %v721_v22, %v710_v21  ;;  %v763_v29 = vadd.f32 %v758_v54, %v748_v26 }
 0x1b3   : >> { %v734_v25 = vadd.f32 %v1600_v60, %v725_v24 }
 0x1b4   : >> { %v745_v47 = vpop.permute.xlu1 %744  ;;  %v773_v40 = vpop.permute.xlu0 %772 }
 0x1b5   : >> { %v778_v33 = vadd.f32 %v773_v40, %v763_v29  ;;  %v749_v59 = vadd.f32 %v745_v47, %v734_v25 }
 0x1b8   : >> { %v760_v27 = vpop.permute.xlu1 %759  ;;  %v788_v32 = vpop.permute.xlu0 %787 }
 0x1b9   : >> { %v793_v35 = vadd.f32 %v788_v32, %v778_v33  ;;  %v764_v43 = vadd.f32 %v760_v27, %v749_v59 }
 0x1bc   : >> { %v775_v34 = vpop.permute.xlu1 %774  ;;  %v803_v45 = vpop.permute.xlu0 %802 }
 0x1bd   : >> { %v808_v36 = vadd.f32 %v803_v45, %v793_v35  ;;  %v779_v49 = vadd.f32 %v775_v34, %v764_v43 }
 0x1c0   : >> { %v790_v23 = vpop.permute.xlu1 %789  ;;  %v818_v31 = vpop.permute.xlu0 %817 }
 0x1c1   : >> { %v823_v44 = vadd.f32 %v818_v31, %v808_v36  ;;  %v794_v55 = vadd.f32 %v790_v23, %v779_v49 }
 0x1c3   : >> { %v832_v50 = vadd.f32 %v1603_v61, %v823_v44 }
 0x1c4   : >> { %v805_v60 = vpop.permute.xlu1 %804  ;;  %v842_v41 = vpop.permute.xlu0 %841 }
 0x1c5   : >> { %v809_v28 = vadd.f32 %v805_v60, %v794_v55  ;;  %v847_v56 = vadd.f32 %v842_v41, %v832_v50 }
 0x1c8   : >> { %v820_v51 = vpop.permute.xlu1 %819  ;;  %v857_v37 = vpop.permute.xlu0 %856 }
 0x1c9   : >> { %v824_v52 = vadd.f32 %v820_v51, %v809_v28  ;;  %v862_v3 = vadd.f32 %v857_v37, %v847_v56 }
 0x1cb   : >> { %v833_v53 = vadd.f32 %v1606_v62, %v824_v52 }
 0x1cc   : >> { %v844_v63 = vpop.permute.xlu1 %843  ;;  %v872_v0 = vpop.permute.xlu0 %871 }
 0x1cd   : >> { %v877_v4 = vadd.f32 %v872_v0, %v862_v3  ;;  %v848_v7 = vadd.f32 %v844_v63, %v833_v53 }
 0x1d0   : >> { %v859_v1 = vpop.permute.xlu1 %858  ;;  %v887_v2 = vpop.permute.xlu0 %886 }
 0x1d1   : >> { %v892_v6 = vadd.f32 %v887_v2, %v877_v4  ;;  %v863_v10 = vadd.f32 %v859_v1, %v848_v7 }
 0x1d4   : >> { %v874_v5 = vpop.permute.xlu1 %873  ;;  %v902_v61 = vpop.permute.xlu0 %901 }
 0x1d5   : >> { %v907_v38 = vadd.f32 %v902_v61, %v892_v6  ;;  %v878_v62 = vadd.f32 %v874_v5, %v863_v10 }
 0x1d8   : >> { %v889_v8 = vpop.permute.xlu1 %888  ;;  %v917_v9 = vpop.permute.xlu0 %916 }
 0x1d9   : >> { %v922_v48 = vadd.f32 %v917_v9, %v907_v38  ;;  %v893_v12 = vadd.f32 %v889_v8, %v878_v62 }
 0x1db   : >> { %926 = vst.msk [vmem:[%s924_s3] sm:$0xff] %vm925_vm6, %v922_v48 }
 0x1dc   : >> { %v904_v11 = vpop.permute.xlu1 %903 }
 0x1dd   : >> { %v908_v46 = vadd.f32 %v904_v11, %v893_v12 }
 0x1df   : > { %212 = sbr.rel (!%p210_p3) target bundleno = 65 (0x41), region = 87 }
 0x1e0   : >> { %v919_v39 = vpop.permute.xlu1 %918 }
 0x1e1   : >> { %v923_v13 = vadd.f32 %v919_v39, %v908_v46 }
 0x1e3   : >> { %927 = vst.msk [vmem:[%s924_s3 + $0x8] sm:$0xff] %vm925_vm6, %v923_v13 }
 0x1e4   : > { %1218 = shalt.err (!%p1215_p10)
}
 0x1e5   : > { %s1219_s19 = scalar_lea.hbm %s1900_s25, 1024  ;;  %s1223_s4 = scalar_lea.hbm %s1953_s2, 2048 }
 0x1e6   : > { %p1220_p11 = scmp.ne.s32.totalorder %s1900_s25, %s1219_s19  ;;  %p1224_p4 = scmp.lt.s32.totalorder %s1900_s25, %s1953_s2 }
 0x1e7   : > { %p1225_p6 = scmp.lt.s32.totalorder %s1223_s4, %s1219_s19 }
 0x1e8   : > { %p1221_p1 = pnand %p1220_p11, %p1377_p8 }
 0x1e9   : > { %p1226_p3 = por %p1225_p6, %p1224_p4 }
 0x1ea   : > { %p1222_p0 = pneg %p1221_p1 }
 0x1ec   : > { %p1227_p7 = pnand %p1226_p3, %p1222_p0 }
 0x1ee   : > { %1230 = shalt.err (!%p1227_p7)
}
 0x1ef   : > { %s1312_s27 = smov 128   ;;  %s1313_s1 = smov 8  }
 0x1f0   : > { %1079 = dma.vmem_to_hbm [thread:$0]  (%p1377_p8), %s1903_s18, 1024, %s1900_s25, %s929_s26, %s1312_s27, %s1312_s27, %s1313_s1  }
 0x1f1 PF: > { %s960_s13 = sand.u32 1, %s1273_s9   ;;  %p1984_p9 = scmp.ne.s32.totalorder %s1971_s21, 0 }
 0x1f2   : > { %p1985_p12 = scmp.ge.s32.totalorder %s1293_s14, 2  ;;  %s961_s29 = scalar_lea.sflag [#allocation5], %s960_s13 }
 0x1f4   : > { %p1090_p13 = pnand %p1985_p12, %p1984_p9 }
 0x1f6   : > { %p1091_p2 = pneg %p1090_p13 }
 0x1f8   : > { %1268 = dma.done.wait (%p1091_p2), %s961_s29, 1024  }
 0x1f9   : > { %1270 = vsyncadd (%p1091_p2), %s961_s29, 4294966272  ;;  %s19_s14 = sadd.s32 1, %s1293_s14   ;;  %s1986_s12 = sld [smem:[#allocation12_spill]] }
 0x1fa   : > { %p16_p5 = scmp.ge.s32.totalorder %s19_s14, 4   ;;  %s1987_s13 = sld [smem:[#allocation13_spill]] }
 0x1fb   : > { %s1988_s9 = smov %s1277_s10  ;;  %s1989_s10 = smov %s1281_s11 }
 0x1fc   : > { %s1990_s11 = smov %s1417_s15  ;;  %18 = sbr.rel (!%p16_p5) target bundleno = 10 (0xa), region = 98 }
 0x201   :  { %966 = vsyncpa [#allocation4], 1 }
 0x202   :  { %968 = vsyncpa [#allocation4 + $0x1], 1 }
 0x203   :  { %969 = vsyncpa [#allocation5], 1 }
 0x204   :  { %971 = vsyncpa [#allocation5 + $0x1], 1 }
 0x205   :  { %972 = vsyncpa [#allocation6], 1 }
 0x206   :  { %974 = vsyncpa [#allocation6 + $0x1], 1 }

</bundles_post_ra>
